<compile_context>
chip_gen: v7x
topology: tpu7x:2x2x1
jax: 0.10.0
libtpu: 0.0.40
codegen_flags: <defaults>
</compile_context>

<pallas_src>
import math

import jax
import jax.numpy as jnp
from jax.experimental import pallas as pl
from jax.experimental.pallas import tpu as pltpu

IN_DIM = 2
OUT_DIM = 2
H_DIM = 400          # logical hidden dim (PyTorch h_dim), kept unpadded
OUT_ROWS = 8         # sublane-padded rows of the transposed output slab


def _round_up(x, m):
    return ((x + m - 1) // m) * m


def _default_tile_b():
    """128 on v5e (4x128^2 MXU), 256 on v6e/v7x (2x256^2 MXU)."""
    try:
        kind = jax.devices()[0].device_kind.lower()
    except Exception:
        return 256
    return 128 if "v5" in kind else 256


def generator_kernel(z_ref,
                     w1_ref, b1_ref,
                     w2_ref, b2_ref,
                     w3_ref, b3_ref,
                     w4t_ref, b4_ref,
                     ot_ref):
    z = z_ref[...]                                       # (TILE_B, 2) f32
    w1 = w1_ref[...]                                     # (2, H) f32

    # Layer 1: Linear(2, H) + ReLU.  K=2 -> two VPU broadcast-FMAs, skip MXU.
    h = z[:, 0:1] * w1[0:1, :] + z[:, 1:2] * w1[1:2, :] + b1_ref[...]
    h = jnp.maximum(h, 0.0)                              # (TILE_B, H) f32

    # Layer 2: Linear(H, H) + ReLU  (bf16 MXU matmul, f32 accumulate).
    h = jnp.dot(h.astype(jnp.bfloat16), w2_ref[...],
                preferred_element_type=jnp.float32)
    h = jnp.maximum(h + b2_ref[...], 0.0)

    # Layer 3: Linear(H, H) + ReLU.
    h = jnp.dot(h.astype(jnp.bfloat16), w3_ref[...],
                preferred_element_type=jnp.float32)
    h = jnp.maximum(h + b3_ref[...], 0.0)

    # Layer 4, transposed output: out_t[o, b] = sum_k w4t[o, k] * h[b, k]
    # (NT dot_general, same pattern as q @ k^T in flash attention).
    out_t = jax.lax.dot_general(
        w4t_ref[...], h.astype(jnp.bfloat16),
        dimension_numbers=(((1,), (1,)), ((), ())),
        preferred_element_type=jnp.float32)              # (OUT_ROWS, TILE_B)
    ot_ref[...] = (out_t + b4_ref[...]).astype(ot_ref.dtype)


def generator_forward(z, params, tile_b=None):
    """z: [B, 2] float32.  params: packed params from pack_params()."""
    B = z.shape[0]
    if tile_b is None:
        tile_b = _default_tile_b()
    # Don't use a tile larger than the (128-aligned) batch itself.
    tile_b = min(tile_b, _round_up(B, 128))
    b_pad = _round_up(B, tile_b)
    if b_pad != B:
        z = jnp.pad(z, ((0, b_pad - B), (0, 0)))

    w1, b1 = params["w1"], params["b1"]
    w2, b2 = params["w2"], params["b2"]
    w3, b3 = params["w3"], params["b3"]
    w4t, b4 = params["w4t"], params["b4"]

    flops = 2 * b_pad * (IN_DIM * H_DIM + 2 * H_DIM * H_DIM + H_DIM * OUT_ROWS)
    bytes_accessed = (int(z.size) * z.dtype.itemsize
                      + sum(int(a.size) * a.dtype.itemsize
                            for a in (w1, b1, w2, b2, w3, b3, w4t, b4))
                      + OUT_ROWS * b_pad * 4)

    vmem = pl.BlockSpec(memory_space=pltpu.MemorySpace.VMEM)
    grid = (b_pad // tile_b,)

    out_t = pl.pallas_call(
        generator_kernel,
        out_shape=jax.ShapeDtypeStruct((OUT_ROWS, b_pad), jnp.float32),
        grid=grid,
        in_specs=[pl.BlockSpec((tile_b, IN_DIM), lambda i: (i, 0))] + [vmem] * 8,
        out_specs=pl.BlockSpec((OUT_ROWS, tile_b), lambda i: (0, i)),
        compiler_params=pltpu.CompilerParams(
            dimension_semantics=("parallel",)),
        cost_estimate=pl.CostEstimate(
            flops=flops, transcendentals=0, bytes_accessed=bytes_accessed),
    )(z, w1, b1, w2, b2, w3, b3, w4t, b4)

    return out_t[:OUT_DIM, :B].T                          # (B, 2)


def init_params(key):
    """f32 params, PyTorch nn.Linear default init (uniform +/- 1/sqrt(fan_in)).
    Weights stored as (in_features, out_features) == W^T of torch layout."""
    dims = [(IN_DIM, H_DIM), (H_DIM, H_DIM), (H_DIM, H_DIM), (H_DIM, OUT_DIM)]
    params = {}
    keys = jax.random.split(key, 2 * len(dims))
    for idx, (fan_in, fan_out) in enumerate(dims):
        bound = 1.0 / math.sqrt(fan_in)
        w = jax.random.uniform(keys[2 * idx], (fan_in, fan_out),
                               minval=-bound, maxval=bound, dtype=jnp.float32)
        b = jax.random.uniform(keys[2 * idx + 1], (1, fan_out),
                               minval=-bound, maxval=bound, dtype=jnp.float32)
        params[f"w{idx + 1}"] = w
        params[f"b{idx + 1}"] = b
    return params


def pack_params(raw):
    """Kernel-ready params: w2/w3 bf16 (the DMA-dominant weights), w1/b* f32,
    w4/b4 transposed and sublane-padded to OUT_ROWS (padding rows are zero)."""
    p = {}
    p["w1"] = raw["w1"]                                   # (2, H)   f32
    p["b1"] = raw["b1"]                                   # (1, H)   f32
    p["w2"] = raw["w2"].astype(jnp.bfloat16)              # (H, H)   bf16
    p["b2"] = raw["b2"]                                   # (1, H)   f32
    p["w3"] = raw["w3"].astype(jnp.bfloat16)              # (H, H)   bf16
    p["b3"] = raw["b3"]                                   # (1, H)   f32
    w4t = raw["w4"].T                                     # (2, H)
    p["w4t"] = jnp.pad(
        w4t, ((0, OUT_ROWS - OUT_DIM), (0, 0))).astype(jnp.bfloat16)  # (8, H)
    b4t = raw["b4"].T                                     # (2, 1)
    p["b4"] = jnp.pad(b4t, ((0, OUT_ROWS - OUT_DIM), (0, 0)))         # (8, 1)
    return p


def reference_forward(z, p):
    """Pure-JAX f32 reference using the same (bf16-rounded) packed params."""
    h = jnp.maximum(z @ p["w1"] + p["b1"], 0.0)
    h = jnp.maximum(h @ p["w2"].astype(jnp.float32) + p["b2"], 0.0)
    h = jnp.maximum(h @ p["w3"].astype(jnp.float32) + p["b3"], 0.0)
    out = h @ p["w4t"].astype(jnp.float32).T + p["b4"].T  # (B, OUT_ROWS)
    return out[:, :OUT_DIM]


if __name__ == "__main__":
    key = jax.random.PRNGKey(0)
    pkey, zkey = jax.random.split(key)
    params = pack_params(init_params(pkey))

    B = 64  # batch of latent samples z ~ [B, 2]
    z = jax.random.normal(zkey, (B, IN_DIM), dtype=jnp.float32)

    out = jax.block_until_ready(generator_forward(z, params))

    ref = reference_forward(z, params)
    assert out.shape == (B, OUT_DIM)
    # Tolerance covers the kernel's bf16 activation casts on the MXU path.
    assert jnp.allclose(out, ref, atol=2e-2, rtol=2e-2), "mismatch vs reference"

    print("KERNEL_OK")
</pallas_src>

<mosaic_0001>
module attributes {stable_mosaic.version = 11 : i64} {
  func.func @generator_kernel(%arg0: i32, %arg1: memref<128x2xf32, #tpu.memory_space<vmem>>, %arg2: memref<2x400xf32, #tpu.memory_space<vmem>>, %arg3: memref<1x400xf32, #tpu.memory_space<vmem>>, %arg4: memref<400x400xbf16, #tpu.memory_space<vmem>>, %arg5: memref<1x400xf32, #tpu.memory_space<vmem>>, %arg6: memref<400x400xbf16, #tpu.memory_space<vmem>>, %arg7: memref<1x400xf32, #tpu.memory_space<vmem>>, %arg8: memref<8x400xbf16, #tpu.memory_space<vmem>>, %arg9: memref<8x1xf32, #tpu.memory_space<vmem>>, %arg10: memref<8x128xf32, #tpu.memory_space<vmem>>) attributes {dimension_semantics = [#tpu.dimension_semantics<parallel>], iteration_bounds = array<i64: 1>, scalar_prefetch = 0 : i64, scratch_operands = 0 : i64, tpu.core_type = #tpu.core_type<tc>, window_params = [{transform_indices = @transform_0, window_bounds = array<i64: 128, 2>}, {pipeline_mode = #tpu.pipeline_mode<synchronous>, transform_indices = @transform_1, window_bounds = array<i64: 2, 400>}, {pipeline_mode = #tpu.pipeline_mode<synchronous>, transform_indices = @transform_2, window_bounds = array<i64: 1, 400>}, {pipeline_mode = #tpu.pipeline_mode<synchronous>, transform_indices = @transform_3, window_bounds = array<i64: 400, 400>}, {pipeline_mode = #tpu.pipeline_mode<synchronous>, transform_indices = @transform_4, window_bounds = array<i64: 1, 400>}, {pipeline_mode = #tpu.pipeline_mode<synchronous>, transform_indices = @transform_5, window_bounds = array<i64: 400, 400>}, {pipeline_mode = #tpu.pipeline_mode<synchronous>, transform_indices = @transform_6, window_bounds = array<i64: 1, 400>}, {pipeline_mode = #tpu.pipeline_mode<synchronous>, transform_indices = @transform_7, window_bounds = array<i64: 8, 400>}, {pipeline_mode = #tpu.pipeline_mode<synchronous>, transform_indices = @transform_8, window_bounds = array<i64: 8, 1>}, {transform_indices = @transform_9, window_bounds = array<i64: 8, 128>}]} {
    %c0 = arith.constant 0 : index
    %c0_0 = arith.constant 0 : index
    %0 = vector.load %arg1[%c0, %c0_0] : memref<128x2xf32, #tpu.memory_space<vmem>>, vector<128x2xf32>
    %c0_1 = arith.constant 0 : index
    %c0_2 = arith.constant 0 : index
    %1 = vector.load %arg2[%c0_1, %c0_2] : memref<2x400xf32, #tpu.memory_space<vmem>>, vector<2x400xf32>
    %2 = vector.extract_strided_slice %0 {offsets = [0, 0], sizes = [128, 1], strides = [1, 1]} : vector<128x2xf32> to vector<128x1xf32>
    %3 = vector.extract_strided_slice %1 {offsets = [0, 0], sizes = [1, 400], strides = [1, 1]} : vector<2x400xf32> to vector<1x400xf32>
    %4 = vector.broadcast %2 : vector<128x1xf32> to vector<128x400xf32>
    %5 = vector.broadcast %3 : vector<1x400xf32> to vector<128x400xf32>
    %6 = arith.mulf %4, %5 : vector<128x400xf32>
    %7 = vector.extract_strided_slice %0 {offsets = [0, 1], sizes = [128, 1], strides = [1, 1]} : vector<128x2xf32> to vector<128x1xf32>
    %8 = vector.extract_strided_slice %1 {offsets = [1, 0], sizes = [1, 400], strides = [1, 1]} : vector<2x400xf32> to vector<1x400xf32>
    %9 = vector.broadcast %7 : vector<128x1xf32> to vector<128x400xf32>
    %10 = vector.broadcast %8 : vector<1x400xf32> to vector<128x400xf32>
    %11 = arith.mulf %9, %10 : vector<128x400xf32>
    %12 = arith.addf %6, %11 : vector<128x400xf32>
    %c0_3 = arith.constant 0 : index
    %c0_4 = arith.constant 0 : index
    %13 = vector.load %arg3[%c0_3, %c0_4] : memref<1x400xf32, #tpu.memory_space<vmem>>, vector<1x400xf32>
    %14 = vector.broadcast %13 : vector<1x400xf32> to vector<128x400xf32>
    %15 = arith.addf %12, %14 : vector<128x400xf32>
    %cst = arith.constant 0.000000e+00 : f32
    %16 = vector.broadcast %cst : f32 to vector<128x400xf32>
    %17 = arith.maximumf %15, %16 : vector<128x400xf32>
    %18 = arith.truncf %17 : vector<128x400xf32> to vector<128x400xbf16>
    %c0_5 = arith.constant 0 : index
    %c0_6 = arith.constant 0 : index
    %19 = vector.load %arg4[%c0_5, %c0_6] : memref<400x400xbf16, #tpu.memory_space<vmem>>, vector<400x400xbf16>
    %cst_7 = arith.constant dense<0.000000e+00> : vector<128x400xf32>
    %20 = tpu.matmul %18, %19, %cst_7 {dimension_numbers = #tpu.dot_dimension_numbers<[1], [0], [0], [1], [0, 0, 1, 1], [], []>} : vector<128x400xbf16>, vector<400x400xbf16>, vector<128x400xf32> -> vector<128x400xf32>
    %c0_8 = arith.constant 0 : index
    %c0_9 = arith.constant 0 : index
    %21 = vector.load %arg5[%c0_8, %c0_9] : memref<1x400xf32, #tpu.memory_space<vmem>>, vector<1x400xf32>
    %22 = vector.broadcast %21 : vector<1x400xf32> to vector<128x400xf32>
    %23 = arith.addf %20, %22 : vector<128x400xf32>
    %cst_10 = arith.constant 0.000000e+00 : f32
    %24 = vector.broadcast %cst_10 : f32 to vector<128x400xf32>
    %25 = arith.maximumf %23, %24 : vector<128x400xf32>
    %26 = arith.truncf %25 : vector<128x400xf32> to vector<128x400xbf16>
    %c0_11 = arith.constant 0 : index
    %c0_12 = arith.constant 0 : index
    %27 = vector.load %arg6[%c0_11, %c0_12] : memref<400x400xbf16, #tpu.memory_space<vmem>>, vector<400x400xbf16>
    %cst_13 = arith.constant dense<0.000000e+00> : vector<128x400xf32>
    %28 = tpu.matmul %26, %27, %cst_13 {dimension_numbers = #tpu.dot_dimension_numbers<[1], [0], [0], [1], [0, 0, 1, 1], [], []>} : vector<128x400xbf16>, vector<400x400xbf16>, vector<128x400xf32> -> vector<128x400xf32>
    %c0_14 = arith.constant 0 : index
    %c0_15 = arith.constant 0 : index
    %29 = vector.load %arg7[%c0_14, %c0_15] : memref<1x400xf32, #tpu.memory_space<vmem>>, vector<1x400xf32>
    %30 = vector.broadcast %29 : vector<1x400xf32> to vector<128x400xf32>
    %31 = arith.addf %28, %30 : vector<128x400xf32>
    %cst_16 = arith.constant 0.000000e+00 : f32
    %32 = vector.broadcast %cst_16 : f32 to vector<128x400xf32>
    %33 = arith.maximumf %31, %32 : vector<128x400xf32>
    %c0_17 = arith.constant 0 : index
    %c0_18 = arith.constant 0 : index
    %34 = vector.load %arg8[%c0_17, %c0_18] : memref<8x400xbf16, #tpu.memory_space<vmem>>, vector<8x400xbf16>
    %35 = arith.truncf %33 : vector<128x400xf32> to vector<128x400xbf16>
    %cst_19 = arith.constant dense<0.000000e+00> : vector<8x128xf32>
    %36 = tpu.matmul %34, %35, %cst_19 {dimension_numbers = #tpu.dot_dimension_numbers<[1], [1], [0], [0], [0, 0, 1, 0], [], []>} : vector<8x400xbf16>, vector<128x400xbf16>, vector<8x128xf32> -> vector<8x128xf32>
    %c0_20 = arith.constant 0 : index
    %c0_21 = arith.constant 0 : index
    %37 = vector.load %arg9[%c0_20, %c0_21] : memref<8x1xf32, #tpu.memory_space<vmem>>, vector<8x1xf32>
    %38 = vector.broadcast %37 : vector<8x1xf32> to vector<8x128xf32>
    %39 = arith.addf %36, %38 : vector<8x128xf32>
    %c0_22 = arith.constant 0 : index
    %c0_23 = arith.constant 0 : index
    %40 = vector.load %arg10[%c0_22, %c0_23] : memref<8x128xf32, #tpu.memory_space<vmem>>, vector<8x128xf32>
    tpu.vector_store %arg10[%c0_22, %c0_23], %39 {strides = array<i32>} : memref<8x128xf32, #tpu.memory_space<vmem>>, vector<8x128xf32>,
    return
  }
  func.func @transform_0(%arg0: i32) -> (i32, i32) {
    %c0_i32 = arith.constant 0 : i32
    %c0_i32_0 = arith.constant 0 : i32
    return %arg0, %c0_i32 : i32, i32
  }
  func.func @transform_1(%arg0: i32) -> (i32, i32) {
    %c0_i32 = arith.constant 0 : i32
    %c0_i32_0 = arith.constant 0 : i32
    %c0_i32_1 = arith.constant 0 : i32
    return %c0_i32, %c0_i32_0 : i32, i32
  }
  func.func @transform_2(%arg0: i32) -> (i32, i32) {
    %c0_i32 = arith.constant 0 : i32
    %c0_i32_0 = arith.constant 0 : i32
    %c0_i32_1 = arith.constant 0 : i32
    return %c0_i32, %c0_i32_0 : i32, i32
  }
  func.func @transform_3(%arg0: i32) -> (i32, i32) {
    %c0_i32 = arith.constant 0 : i32
    %c0_i32_0 = arith.constant 0 : i32
    %c0_i32_1 = arith.constant 0 : i32
    return %c0_i32, %c0_i32_0 : i32, i32
  }
  func.func @transform_4(%arg0: i32) -> (i32, i32) {
    %c0_i32 = arith.constant 0 : i32
    %c0_i32_0 = arith.constant 0 : i32
    %c0_i32_1 = arith.constant 0 : i32
    return %c0_i32, %c0_i32_0 : i32, i32
  }
  func.func @transform_5(%arg0: i32) -> (i32, i32) {
    %c0_i32 = arith.constant 0 : i32
    %c0_i32_0 = arith.constant 0 : i32
    %c0_i32_1 = arith.constant 0 : i32
    return %c0_i32, %c0_i32_0 : i32, i32
  }
  func.func @transform_6(%arg0: i32) -> (i32, i32) {
    %c0_i32 = arith.constant 0 : i32
    %c0_i32_0 = arith.constant 0 : i32
    %c0_i32_1 = arith.constant 0 : i32
    return %c0_i32, %c0_i32_0 : i32, i32
  }
  func.func @transform_7(%arg0: i32) -> (i32, i32) {
    %c0_i32 = arith.constant 0 : i32
    %c0_i32_0 = arith.constant 0 : i32
    %c0_i32_1 = arith.constant 0 : i32
    return %c0_i32, %c0_i32_0 : i32, i32
  }
  func.func @transform_8(%arg0: i32) -> (i32, i32) {
    %c0_i32 = arith.constant 0 : i32
    %c0_i32_0 = arith.constant 0 : i32
    %c0_i32_1 = arith.constant 0 : i32
    return %c0_i32, %c0_i32_0 : i32, i32
  }
  func.func @transform_9(%arg0: i32) -> (i32, i32) {
    %c0_i32 = arith.constant 0 : i32
    %c0_i32_0 = arith.constant 0 : i32
    return %c0_i32, %arg0 : i32, i32
  }
}

</mosaic_0001>

<bundles_post_ra>
// kernel: tpu_custom_call.1
= control target key start
LH: loop header
LB: loop body
LE: loop exit
PB: predicated region body
PF: predicated region fallthrough
CT: control target
= control target key end

     0   :  { %14 = vsyncpa [#allocation3], 0  ;;  %s5045_s0 = inlined_call_operand.vmem [shape: f32[128,2], index: 0, kind: input, shape index: {}]   ;;  %s5046_s1 = inlined_call_operand.vmem [shape: f32[2,400], index: 1, kind: input, shape index: {}]   ;;  %s5047_s2 = inlined_call_operand.vmem [shape: f32[1,400], index: 2, kind: input, shape index: {}]   ;;  %s5048_s3 = inlined_call_operand.hbm [shape: bf16[400,400], index: 3, kind: input, shape index: {}]   ;;  %s5049_s4 = inlined_call_operand.vmem [shape: f32[1,400], index: 4, kind: input, shape index: {}]   ;;  %s5050_s5 = inlined_call_operand.hbm [shape: bf16[400,400], index: 5, kind: input, shape index: {}]   ;;  %s5051_s6 = inlined_call_operand.vmem [shape: f32[1,400], index: 6, kind: input, shape index: {}]   ;;  %s5052_s7 = inlined_call_operand.vmem [shape: bf16[8,400], index: 7, kind: input, shape index: {}]   ;;  %s5053_s8 = inlined_call_operand.vmem [shape: f32[8,1], index: 8, kind: input, shape index: {}]   ;;  %s5054_s9 = inlined_call_operand.hbm [shape: f32[8,128], index: 9, kind: output, shape index: {}]  }
   0x1   :  { %15 = vsyncpa [#allocation6], 0 }
   0x2   :  { %16 = vsyncpa [#allocation4], 0  ;;  %s4113_s30 = smov [#allocation2]   ;;  %s4041_s13 = scalar_lea.hbm %s5048_s3, 12800 }
   0x3   :  { %s28_s10 = sshll.u32 %s4113_s30, 4  ;;  %p4042_p0 = scmp.ne.s32.totalorder %s5048_s3, %s4041_s13  ;;  %s29_s10 = int_to_ptr.vmem [resolvable:$true] %s28_s10 }
   0x4   :  { %p4045_p1 = scmp.lt.u32.totalorder %s4041_s13, %s5048_s3 }
   0x6   :  { %p4047_p2 = pnand %p4045_p1, %p4042_p0 }
   0x8   :  { %4050 = shalt.err (!%p4047_p2)
}
   0x9   :  { %s4051_s18 = scalar_lea.vmem %s29_s10, 12800  ;;  %p4056_p4 = scmp.lt.s32.totalorder %s29_s10, %s29_s10 }
   0xa   :  { %p4052_p3 = scmp.ne.s32.totalorder %s29_s10, %s4051_s18  ;;  %p4057_p5 = scmp.lt.s32.totalorder %s4051_s18, %s4051_s18 }
   0xc   :  { %p4058_p6 = por %p4057_p5, %p4056_p4 }
   0xe   :  { %p4059_p7 = pnand %p4058_p6, %p4052_p3 }
  0x10   :  { %4062 = shalt.err (!%p4059_p7)
}
  0x11   :  { %s4114_s19 = smov 256   ;;  %s4115_s20 = smov 16  }
  0x12   :  { %34 = dma.hbm_to_vmem [thread:$0]  %s5048_s3, 12800, %s29_s10, [#allocation3], %s4114_s19, %s4114_s19, %s4115_s20  }
  0x13   :  { %s4116_s23 = smov [#allocation5]   ;;  %s4063_s27 = scalar_lea.hbm %s5050_s5, 12800 }
  0x14   :  { %s42_s24 = sshll.u32 %s4116_s23, 4  ;;  %p4064_p8 = scmp.ne.s32.totalorder %s5050_s5, %s4063_s27  ;;  %s43_s24 = int_to_ptr.vmem [resolvable:$true] %s42_s24 }
  0x15   :  { %p4067_p9 = scmp.lt.u32.totalorder %s4063_s27, %s5050_s5 }
  0x17   :  { %p4069_p10 = pnand %p4067_p9, %p4064_p8 }
  0x19   :  { %4072 = shalt.err (!%p4069_p10)
}
  0x1a   :  { %s4073_s12 = scalar_lea.vmem %s43_s24, 12800  ;;  %p4078_p12 = scmp.lt.s32.totalorder %s43_s24, %s43_s24 }
  0x1b   :  { %p4074_p11 = scmp.ne.s32.totalorder %s43_s24, %s4073_s12  ;;  %p4079_p13 = scmp.lt.s32.totalorder %s4073_s12, %s4073_s12 }
  0x1d   :  { %p4080_p0 = por %p4079_p13, %p4078_p12 }
  0x1f   :  { %p4081_p1 = pnand %p4080_p0, %p4074_p11 }
  0x21   :  { %4084 = shalt.err (!%p4081_p1)
}
  0x22   :  { %48 = dma.hbm_to_vmem [thread:$0]  %s5050_s5, 12800, %s43_s24, [#allocation6], %s4114_s19, %s4114_s19, %s4115_s20  }
  0x23   :  { %4107 = dma.done.wait [#allocation3], 12800  }
  0x24   :  { %4108 = vsyncadd [#allocation3], 4294954496 }
  0x25   :  { %4109 = dma.done.wait [#allocation6], 12800  }
  0x26   :  { %4110 = vsyncadd [#allocation6], 4294954496  ;;  %v4117_v0 = vmov 1   ;;  %v4118_v1 = vmov 0   ;;  %v62_v2 = vld [vmem:[%s5045_s0] sm:$0xff]  ;;  %v63_v3 = vld [vmem:[%s5045_s0 + $0x8] sm:$0xff]  ;;  %v160_v35 = vlaneseq }
  0x27   :  { %3715 = vset.pattern.permute.xlu1 %v4117_v0  ;;  %3714 = vset.pattern.permute.xlu0 %v4118_v1  ;;  %v64_v4 = vld [vmem:[%s5045_s0 + $0x10] sm:$0xff]  ;;  %v3739_v6 = vld [vmem:[#allocation2 + $0xc] ss:$16 sps:$4 sm:$0xff]   ;;  %v3742_v9 = vld [vmem:[#allocation2 + $0x8] ss:$16 sps:$4 sm:$0xff]   ;;  %vm1292_vm0 = vcmask 130048  }
  0x28   :  { %261 = vperm.xlu1 %3715, %v62_v2   ;;  %81 = vperm.xlu0 %3714, %v62_v2   ;;  %v3737_v5 = vld [vmem:[#allocation2 + $0x4] ss:$16 sps:$4 sm:$0xff]   ;;  %v65_v7 = vld [vmem:[%s5045_s0 + $0x18] sm:$0xff]  ;;  %v3741_v8 = vld [vmem:[#allocation2] ss:$16 sps:$4 sm:$0xff]   ;;  %v4235_v42 = vshrl.u32 %v160_v35, 7 }
  0x29   :  { %1317 = vmatprep.subr.bf16.mxu0 %v3737_v5  ;;  %1543 = vmatprep.subr.bf16.mxu1 %v3739_v6  ;;  %v3743_v10 = vld [vmem:[#allocation2 + $0x24] ss:$16 sps:$4 sm:$0xff]   ;;  %v3745_v11 = vld [vmem:[#allocation2 + $0x2c] ss:$16 sps:$4 sm:$0xff]   ;;  %v3747_v12 = vld [vmem:[#allocation2 + $0x20] ss:$16 sps:$4 sm:$0xff]  }
  0x2a   :  { %1318 = vmatpush1.bf16.msra.mxu0 %v3741_v8  ;;  %1544 = vmatpush1.bf16.msra.mxu1 %v3742_v9  ;;  %v3748_v13 = vld [vmem:[#allocation2 + $0x28] ss:$16 sps:$4 sm:$0xff]   ;;  %v3749_v14 = vld [vmem:[#allocation2 + $0x44] ss:$16 sps:$4 sm:$0xff]   ;;  %v3751_v15 = vld [vmem:[#allocation2 + $0x4c] ss:$16 sps:$4 sm:$0xff]  }
  0x2b   :  { %1319 = vmatprep.subr.bf16.mxu0 %v3743_v10  ;;  %1545 = vmatprep.subr.bf16.mxu1 %v3745_v11  ;;  %v66_v16 = vld [vmem:[%s5045_s0 + $0x20] sm:$0xff]  ;;  %v68_v17 = vld [vmem:[%s5045_s0 + $0x30] sm:$0xff]  ;;  %v3754_v19 = vld [vmem:[#allocation2 + $0x48] ss:$16 sps:$4 sm:$0xff]   ;;  %v334_v46 = vsub.s32 5, %v4235_v42  ;;  %v338_v48 = vsub.s32 7, %v4235_v42 }
  0x2c   :  { %265 = vperm.xlu1 %3715, %v63_v3   ;;  %86 = vperm.xlu0 %3714, %v63_v3   ;;  %v3753_v18 = vld [vmem:[#allocation2 + $0x40] ss:$16 sps:$4 sm:$0xff]   ;;  %v3755_v20 = vld [vmem:[#allocation2 + $0x64] ss:$16 sps:$4 sm:$0xff]   ;;  %v3757_v21 = vld [vmem:[#allocation2 + $0x6c] ss:$16 sps:$4 sm:$0xff]  }
  0x2d   :  { %v3759_v22 = vld [vmem:[#allocation2 + $0x60] ss:$16 sps:$4 sm:$0xff]   ;;  %v67_v23 = vld [vmem:[%s5045_s0 + $0x28] sm:$0xff]  ;;  %v3761_v25 = vld [vmem:[#allocation2 + $0x84] ss:$16 sps:$4 sm:$0xff]   ;;  %v170_v50 = vsub.s32 4, %v4235_v42 }
  0x2e   :  { %1320 = vmatpush1.bf16.msra.mxu0 %v3747_v12  ;;  %1546 = vmatpush1.bf16.msra.mxu1 %v3748_v13  ;;  %v3760_v24 = vld [vmem:[#allocation2 + $0x68] ss:$16 sps:$4 sm:$0xff]   ;;  %v3763_v26 = vld [vmem:[#allocation2 + $0x8c] ss:$16 sps:$4 sm:$0xff]   ;;  %v3765_v27 = vld [vmem:[#allocation2 + $0x80] ss:$16 sps:$4 sm:$0xff]  }
  0x2f   :  { %1321 = vmatprep.subr.bf16.mxu0 %v3749_v14  ;;  %1547 = vmatprep.subr.bf16.mxu1 %v3751_v15  ;;  %v3766_v28 = vld [vmem:[#allocation2 + $0x88] ss:$16 sps:$4 sm:$0xff]   ;;  %v3767_v29 = vld [vmem:[#allocation2 + $0xa4] ss:$16 sps:$4 sm:$0xff]   ;;  %v3769_v30 = vld [vmem:[#allocation2 + $0xac] ss:$16 sps:$4 sm:$0xff]  }
  0x30   :  { %3716 = vset.pattern.permute.xlu1 %v4118_v1  ;;  %91 = vperm.xlu0 %3714, %v64_v4   ;;  %v4226_v31 = vld [vmem:[%s5045_s0 + $0x48] sm:$0xff]  ;;  %v3771_v32 = vld [vmem:[#allocation2 + $0xa0] ss:$16 sps:$4 sm:$0xff]   ;;  %v3773_v34 = vld [vmem:[#allocation2 + $0xc4] ss:$16 sps:$4 sm:$0xff]   ;;  %v174_v53 = vsub.s32 6, %v4235_v42 }
  0x31   :  { %96 = vperm.xlu1 %3716, %v65_v7   ;;  %v3772_v33 = vld [vmem:[#allocation2 + $0xa8] ss:$16 sps:$4 sm:$0xff]   ;;  %v3775_v36 = vld [vmem:[#allocation2 + $0xcc] ss:$16 sps:$4 sm:$0xff]   ;;  %v72_v38 = vld [vmem:[%s5045_s0 + $0x50] sm:$0xff]  ;;  %v4303_v35 = vsub.s32 0, %v4235_v42 }
  0x32   :  { %1322 = vmatpush1.bf16.msra.mxu0 %v3753_v18  ;;  %1548 = vmatpush1.bf16.msra.mxu1 %v3754_v19  ;;  %v69_v37 = vld [vmem:[%s5045_s0 + $0x38] sm:$0xff]  ;;  %v3777_v39 = vld [vmem:[#allocation2 + $0xc0] ss:$16 sps:$4 sm:$0xff]   ;;  %v3779_v41 = vld [vmem:[#allocation2 + $0xe4] ss:$16 sps:$4 sm:$0xff]  }
  0x33   :  { %1323 = vmatprep.subr.bf16.mxu0 %v3755_v20  ;;  %1549 = vmatprep.subr.bf16.mxu1 %v3757_v21  ;;  %v3778_v40 = vld [vmem:[#allocation2 + $0xc8] ss:$16 sps:$4 sm:$0xff]   ;;  %v3781_v43 = vld [vmem:[#allocation2 + $0xec] ss:$16 sps:$4 sm:$0xff]   ;;  %v3783_v44 = vld [vmem:[#allocation2 + $0xe0] ss:$16 sps:$4 sm:$0xff]  }
  0x34   :  { %3717 = vset.pattern.permute.xlu0 %v4117_v0  ;;  %v3784_v45 = vld [vmem:[#allocation2 + $0xe8] ss:$16 sps:$4 sm:$0xff]   ;;  %v3785_v47 = vld [vmem:[#allocation2 + $0x104] ss:$16 sps:$4 sm:$0xff]   ;;  %v3787_v49 = vld [vmem:[#allocation2 + $0x10c] ss:$16 sps:$4 sm:$0xff]  }
  0x35   :  { %3718 = vset.pattern.permute.xlu1 %v4117_v0  ;;  %269 = vperm.xlu0 %3717, %v64_v4   ;;  %v3789_v51 = vld [vmem:[#allocation2 + $0x100] ss:$16 sps:$4 sm:$0xff]   ;;  %v3790_v55 = vld [vmem:[#allocation2 + $0x108] ss:$16 sps:$4 sm:$0xff]   ;;  %v3791_v57 = vld [vmem:[#allocation2 + $0x124] ss:$16 sps:$4 sm:$0xff]  }
  0x36   :  { %273 = vperm.xlu1 %3718, %v65_v7   ;;  %1324 = vmatpush1.bf16.msra.mxu0 %v3759_v22  ;;  %v4246_v52 = vld [vmem:[%s5046_s1] sm:$0xff]  ;;  %v4262_v59 = vld [vmem:[%s5045_s0 + $0x68] sm:$0xff]  ;;  %v76_v3 = vld [vmem:[%s5045_s0 + $0x70] sm:$0xff]  ;;  %5068 = vst [vmem:[#allocation13_spill] sm:$0xff] %v4303_v35 }
  0x37   :  { %1550 = vmatpush1.bf16.msra.mxu1 %v3760_v24  ;;  %1325 = vmatprep.subr.bf16.mxu0 %v3761_v25  ;;  %v70_v54 = vld [vmem:[%s5045_s0 + $0x40] sm:$0xff]  ;;  %v4254_v56 = vrot.slane %v4246_v52, %v334_v46  ;;  %v4257_v58 = vrot.slane %v4246_v52, %v338_v48  ;;  %v3793_v60 = vld [vmem:[#allocation2 + $0x12c] ss:$16 sps:$4 sm:$0xff]   ;;  %v4265_v61 = vrot.slane %v4246_v52, %v170_v50  ;;  %v3796_v2 = vld [vmem:[#allocation2 + $0x128] ss:$16 sps:$4 sm:$0xff]  }
  0x38   :  { %1551 = vmatprep.subr.bf16.mxu1 %v3763_v26  ;;  %v3795_v62 = vld [vmem:[#allocation2 + $0x120] ss:$16 sps:$4 sm:$0xff]   ;;  %v4269_v63 = vrot.slane %v4246_v52, %v174_v53  ;;  %v3797_v4 = vld [vmem:[#allocation2 + $0x144] ss:$16 sps:$4 sm:$0xff]   ;;  %v3799_v5 = vld [vmem:[#allocation2 + $0x14c] ss:$16 sps:$4 sm:$0xff]  }
  0x39   :  { %285 = vperm.xlu0 %3717, %v68_v17   ;;  %v3801_v6 = vld [vmem:[#allocation2 + $0x140] ss:$16 sps:$4 sm:$0xff]   ;;  %v3802_v7 = vld [vmem:[#allocation2 + $0x148] ss:$16 sps:$4 sm:$0xff]   ;;  %v3803_v8 = vld [vmem:[#allocation2 + $0x164] ss:$16 sps:$4 sm:$0xff]   ;;  %v4341_v46 = vrot.slane %v4265_v61, %v4303_v35 }
  0x3a   :  { %3719 = vset.pattern.permute.xlu1 %v4118_v1  ;;  %1326 = vmatpush1.bf16.msra.mxu0 %v3765_v27  ;;  %v3805_v9 = vld [vmem:[#allocation2 + $0x16c] ss:$16 sps:$4 sm:$0xff]   ;;  %v3807_v10 = vld [vmem:[#allocation2 + $0x160] ss:$16 sps:$4 sm:$0xff]   ;;  %v3808_v11 = vld [vmem:[#allocation2 + $0x168] ss:$16 sps:$4 sm:$0xff]  }
  0x3b   :  { %101 = vperm.xlu1 %3719, %v66_v16   ;;  %1552 = vmatpush1.bf16.msra.mxu1 %v3766_v28  ;;  %v3809_v12 = vld [vmem:[#allocation2 + $0x184] ss:$16 sps:$4 sm:$0xff]   ;;  %v73_v13 = vld [vmem:[%s5045_s0 + $0x58] sm:$0xff]  ;;  %v3813_v15 = vld [vmem:[#allocation2 + $0x180] ss:$16 sps:$4 sm:$0xff]  }
  0x3c   :  { %1327 = vmatprep.subr.bf16.mxu0 %v3767_v29  ;;  %1553 = vmatprep.subr.bf16.mxu1 %v3769_v30  ;;  %v3811_v14 = vld [vmem:[#allocation2 + $0x18c] ss:$16 sps:$4 sm:$0xff]   ;;  %v3819_v19 = vld [vmem:[#allocation2 + $0x1a0] ss:$16 sps:$4 sm:$0xff]   ;;  %v3820_v20 = vld [vmem:[#allocation2 + $0x1a8] ss:$16 sps:$4 sm:$0xff]  }
  0x3d   :  { %3722 = vset.pattern.permute.xlu0 %v4118_v1  ;;  %v3817_v18 = vld [vmem:[#allocation2 + $0x1ac] ss:$16 sps:$4 sm:$0xff]   ;;  %v3821_v21 = vld [vmem:[#allocation2 + $0x1c4] ss:$16 sps:$4 sm:$0xff]   ;;  %v3826_v24 = vld [vmem:[#allocation2 + $0x1c8] ss:$16 sps:$4 sm:$0xff]  }
  0x3e   :  { %106 = vperm.xlu0 %3722, %v67_v23   ;;  %1328 = vmatpush1.bf16.msra.mxu0 %v3771_v32  ;;  %v3823_v22 = vld [vmem:[#allocation2 + $0x1cc] ss:$16 sps:$4 sm:$0xff]   ;;  %v74_v25 = vld [vmem:[%s5045_s0 + $0x60] sm:$0xff]  ;;  %v3832_v29 = vld [vmem:[#allocation2 + $0x1e8] ss:$16 sps:$4 sm:$0xff]  }
  0x3f   :  { %3720 = vset.pattern.permute.xlu1 %v4117_v0  ;;  %1554 = vmatpush1.bf16.msra.mxu1 %v3772_v33  ;;  %v3827_v26 = vld [vmem:[#allocation2 + $0x1e4] ss:$16 sps:$4 sm:$0xff]   ;;  %v3829_v27 = vld [vmem:[#allocation2 + $0x1ec] ss:$16 sps:$4 sm:$0xff]   ;;  %v3831_v28 = vld [vmem:[#allocation2 + $0x1e0] ss:$16 sps:$4 sm:$0xff]  }
  0x40   :  { %277 = vperm.xlu1 %3720, %v66_v16   ;;  %1329 = vmatprep.subr.bf16.mxu0 %v3773_v34  ;;  %v3814_v16 = vld [vmem:[#allocation2 + $0x188] ss:$16 sps:$4 sm:$0xff]   ;;  %v3835_v30 = vld [vmem:[#allocation2 + $0x204] ss:$16 sps:$4 sm:$0xff]   ;;  %v4297_v33 = vsub.s32 1, %v4235_v42  ;;  %v4300_v34 = vsub.s32 3, %v4235_v42 }
  0x41   :  { %1555 = vmatprep.subr.bf16.mxu1 %v3775_v36  ;;  %v77_v32 = vld [vmem:[%s5045_s0 + $0x78] sm:$0xff]  ;;  %v4306_v36 = vsub.s32 2, %v4235_v42 }
  0x42   :  { %111 = vperm.xlu0 %3722, %v68_v17   ;;  %1330 = vmatpush1.bf16.msra.mxu0 %v3777_v39  ;;  %v3815_v17 = vld [vmem:[#allocation2 + $0x1a4] ss:$16 sps:$4 sm:$0xff]   ;;  %5066 = vst [vmem:[#allocation11_spill] sm:$0xff] %v4297_v33  ;;  %5067 = vst [vmem:[#allocation12_spill] sm:$0xff] %v4300_v34  ;;  %v4328_v42 = vrot.slane %v4257_v58, %v4297_v33 }
  0x43   :  { %1556 = vmatpush1.bf16.msra.mxu1 %v3778_v40  ;;  %1331 = vmatprep.subr.bf16.mxu0 %v3779_v41  ;;  %5069 = vst [vmem:[#allocation14_spill] sm:$0xff] %v4306_v36  ;;  %v4324_v41 = vrot.slane %v4254_v56, %v4297_v33 }
  0x44   :  { %281 = vperm.xlu1 %3720, %v67_v23   ;;  %1557 = vmatprep.subr.bf16.mxu1 %v3781_v43  ;;  %v3825_v23 = vld [vmem:[#allocation2 + $0x1c0] ss:$16 sps:$4 sm:$0xff]  }
  0x45   :  { %v488_v43 = vld [vmem:[%s5047_s2] sm:$0xf] }
  0x46   :  { %126 = vperm.xlu0 %3722, %v4226_v31   ;;  %1332 = vmatpush1.bf16.msra.mxu0 %v3783_v44  ;;  %v4351_v50 = vrot.slane %v488_v43, %v4300_v34  ;;  %v4365_v61 = vrot.slane %v488_v43, %v4303_v35 }
  0x47   :  { %1558 = vmatpush1.bf16.msra.mxu1 %v3784_v45  ;;  %1333 = vmatprep.subr.bf16.mxu0 %v3785_v47  ;;  %v4345_v47 = vrot.slane %v4269_v63, %v4303_v35 }
  0x48   :  { %3721 = vset.pattern.permute.xlu1 %v4118_v1  ;;  %1559 = vmatprep.subr.bf16.mxu1 %v3787_v49  ;;  %v4348_v49 = vrot.slane %v488_v43, %v4306_v36 }
  0x49   :  { %116 = vperm.xlu1 %3721, %v69_v37  }
  0x4a   :  { %3727 = vset.pattern.permute.xlu0 %v4117_v0  ;;  %1334 = vmatpush1.bf16.msra.mxu0 %v3789_v51 }
  0x4b   :  { %301 = vperm.xlu0 %3727, %v72_v38   ;;  %1560 = vmatpush1.bf16.msra.mxu1 %v3790_v55 }
  0x4c   :  { %1335 = vmatprep.subr.bf16.mxu0 %v3791_v57  ;;  %1561 = vmatprep.subr.bf16.mxu1 %v3793_v60  ;;  %v4362_v60 = vrot.slane %v488_v43, %v4297_v33 }
  0x4d   :  { %3723 = vset.pattern.permute.xlu1 %v4117_v0 }
  0x4e   :  { %289 = vperm.xlu1 %3723, %v69_v37   ;;  %1336 = vmatpush1.bf16.msra.mxu0 %v3795_v62  ;;  %v327_v37 = vrot.slane %v4246_v52, %v4297_v33 }
  0x4f   :  { %3728 = vset.pattern.permute.xlu0 %v4118_v1  ;;  %1562 = vmatpush1.bf16.msra.mxu1 %v3796_v2 }
  0x50   :  { %131 = vperm.xlu0 %3728, %v72_v38   ;;  %1337 = vmatprep.subr.bf16.mxu0 %v3797_v4  ;;  %v167_v38 = vrot.slane %v4246_v52, %v4306_v36  ;;  %v4317_v39 = vrot.slane %v327_v37, %v4297_v33 }
  0x51   :  { %1563 = vmatprep.subr.bf16.mxu1 %v3799_v5 }
  0x52   :  { %3724 = vset.pattern.permute.xlu1 %v4118_v1  ;;  %1338 = vmatpush1.bf16.msra.mxu0 %v3801_v6  ;;  %v4337_v45 = vrot.slane %v167_v38, %v4303_v35 }
  0x53   :  { %121 = vperm.xlu1 %3724, %v70_v54   ;;  %1564 = vmatpush1.bf16.msra.mxu1 %v3802_v7 }
  0x54   :  { %146 = vperm.xlu0 %3728, %v4262_v59   ;;  %1339 = vmatprep.subr.bf16.mxu0 %v3803_v8 }
  0x55   :  { %1565 = vmatprep.subr.bf16.mxu1 %v3805_v9 }
  0x56   :  { %1340 = vmatpush1.bf16.msra.mxu0 %v3807_v10 }
  0x57   :  { %3725 = vset.pattern.permute.xlu1 %v4117_v0  ;;  %1566 = vmatpush1.bf16.msra.mxu1 %v3808_v11 }
  0x58   :  { %293 = vperm.xlu1 %3725, %v70_v54   ;;  %151 = vperm.xlu0 %3728, %v76_v3  }
  0x59   :  { %1341 = vmatprep.subr.bf16.mxu0 %v3809_v12  ;;  %1567 = vmatprep.subr.bf16.mxu1 %v3811_v14 }
  0x5a   :  { %1342 = vmatpush1.bf16.msra.mxu0 %v3813_v15 }
  0x5b   :  { %1568 = vmatpush1.bf16.msra.mxu1 %v3814_v16  ;;  %1343 = vmatprep.subr.bf16.mxu0 %v3815_v17 }
  0x5c   :  { %297 = vperm.xlu1 %3725, %v4226_v31   ;;  %3733 = vset.pattern.permute.xlu0 %v4117_v0  ;;  %v3847_v31 = vld [vmem:[#allocation2 + $0x20c] ss:$16 sps:$4 sm:$0xff]  }
  0x5d   :  { %317 = vperm.xlu0 %3733, %v76_v3   ;;  %1569 = vmatprep.subr.bf16.mxu1 %v3817_v18 }
  0x5e   :  { %1344 = vmatpush1.bf16.msra.mxu0 %v3819_v19 }
  0x5f   :  { %1570 = vmatpush1.bf16.msra.mxu1 %v3820_v20  ;;  %1345 = vmatprep.subr.bf16.mxu0 %v3821_v21 }
  0x60   :  { %3726 = vset.pattern.permute.xlu1 %v4118_v1  ;;  %1571 = vmatprep.subr.bf16.mxu1 %v3823_v22 }
  0x61   :  { %136 = vperm.xlu1 %3726, %v73_v13   ;;  %3736 = vset.pattern.permute.xlu0 %v4118_v1 }
  0x62   :  { %1346 = vmatpush1.bf16.msra.mxu0 %v3825_v23 }
  0x63   :  { %1572 = vmatpush1.bf16.msra.mxu1 %v3826_v24  ;;  %1347 = vmatprep.subr.bf16.mxu0 %v3827_v26 }
  0x64   :  { %1573 = vmatprep.subr.bf16.mxu1 %v3829_v27 }
  0x65   :  { %3729 = vset.pattern.permute.xlu1 %v4117_v0 }
  0x66   :  { %305 = vperm.xlu1 %3729, %v73_v13   ;;  %1348 = vmatpush1.bf16.msra.mxu0 %v3831_v28 }
  0x67   :  { %1574 = vmatpush1.bf16.msra.mxu1 %v3832_v29  ;;  %1430 = vmatprep.subr.bf16.mxu0 %v3835_v30 }
  0x68   :  { %1656 = vmatprep.subr.bf16.mxu1 %v3847_v31 }
  0x6a   :  { %3730 = vset.pattern.permute.xlu1 %v4118_v1 }
  0x6b   :  { %141 = vperm.xlu1 %3730, %v74_v25  }
  0x6f   :  { %3731 = vset.pattern.permute.xlu1 %v4117_v0 }
  0x70   :  { %309 = vperm.xlu1 %3731, %v74_v25  }
  0x74   :  { %313 = vperm.xlu1 %3731, %v4262_v59  }
  0x78   :  { %3732 = vset.pattern.permute.xlu1 %v4118_v1 }
  0x79   :  { %156 = vperm.xlu1 %3732, %v77_v32  }
  0x7d   :  { %3734 = vset.pattern.permute.xlu1 %v4117_v0  ;;  %v331_v0 = vrot.slane %v4246_v52, %v4300_v34 }
  0x7e   :  { %321 = vperm.xlu1 %3734, %v77_v32  }
  0x7f   :  { %v4320_v40 = vrot.slane %v331_v0, %v4297_v33  ;;  %v3889_v33 = vld [vmem:[#allocation5 + $0x4] ss:$16 sps:$4 sm:$0xff]  }
  0x82   :  { %3735 = vset.pattern.permute.xlu1 %v4118_v1  ;;  %v163_v1 = vrot.slane %v4246_v52, %v4303_v35 }
  0x84   :  { %v4334_v44 = vrot.slane %v163_v1, %v4303_v35 }
  0xa7   :  { %v262_v48 = vpop.permute.xlu1 %261  ;;  %v82_v51 = vpop.permute.xlu0 %81 }
  0xa8   :  { %v360_v52 = vmul.f32 %v4317_v39, %v262_v48  ;;  %v361_v53 = vmul.f32 %v4320_v40, %v262_v48  ;;  %v362_v54 = vmul.f32 %v4324_v41, %v262_v48  ;;  %v363_v55 = vmul.f32 %v4328_v42, %v262_v48 }
  0xa9   :  { %v196_v56 = vmul.f32 %v4334_v44, %v82_v51  ;;  %v197_v57 = vmul.f32 %v4337_v45, %v82_v51  ;;  %v198_v58 = vmul.f32 %v4341_v46, %v82_v51  ;;  %v199_v59 = vmul.f32 %v4345_v47, %v82_v51 }
  0xab   :  { %v424_v62 = vadd.f32 %v360_v52, %v196_v56  ;;  %v426_v63 = vadd.f32 %v362_v54, %v198_v58  ;;  %v427_v2 = vadd.f32 %v363_v55, %v199_v59  ;;  %v266_v3 = vpop.permute.xlu1 %265  ;;  %v87_v4 = vpop.permute.xlu0 %86  ;;  %v425_v5 = vadd.f32 %v361_v53, %v197_v57 }
  0xac   :  { %v364_v6 = vmul.f32 %v4317_v39, %v266_v3  ;;  %v365_v7 = vmul.f32 %v4320_v40, %v266_v3  ;;  %v366_v8 = vmul.f32 %v4324_v41, %v266_v3  ;;  %v367_v9 = vmul.f32 %v4328_v42, %v266_v3 }
  0xad   :  { %v4372_v10 = vadd.f32 %v4348_v49, %v426_v63  ;;  %v4375_v11 = vadd.f32 %v4351_v50, %v427_v2  ;;  %v200_v12 = vmul.f32 %v4334_v44, %v87_v4  ;;  %v201_v13 = vmul.f32 %v4337_v45, %v87_v4 }
  0xae   :  { %v202_v14 = vmul.f32 %v4341_v46, %v87_v4  ;;  %v203_v15 = vmul.f32 %v4345_v47, %v87_v4  ;;  %v511_v17 = vadd.f32 %v4362_v60, %v425_v5  ;;  %v510_v18 = vadd.f32 %v4365_v61, %v424_v62 }
  0xaf   :  { %v92_v16 = vpop.permute.xlu0 %91  ;;  %v428_v19 = vadd.f32 %v364_v6, %v200_v12  ;;  %v429_v23 = vadd.f32 %v365_v7, %v201_v13 }
  0xb0   :  { %v430_v20 = vadd.f32 %v366_v8, %v202_v14  ;;  %v431_v21 = vadd.f32 %v367_v9, %v203_v15  ;;  %v97_v22 = vpop.permute.xlu1 %96  ;;  %v206_v28 = vmul.f32 %v4341_v46, %v92_v16  ;;  %v207_v29 = vmul.f32 %v4345_v47, %v92_v16 }
  0xb1   :  { %v210_v24 = vmul.f32 %v4341_v46, %v97_v22  ;;  %v211_v25 = vmul.f32 %v4345_v47, %v97_v22  ;;  %v208_v30 = vmul.f32 %v4334_v44, %v97_v22  ;;  %v209_v31 = vmul.f32 %v4337_v45, %v97_v22 }
  0xb2   :  { %v4386_v26 = vadd.f32 %v4348_v49, %v430_v20  ;;  %v517_v27 = vadd.f32 %v4351_v50, %v431_v21  ;;  %v204_v32 = vmul.f32 %v4334_v44, %v92_v16  ;;  %v205_v37 = vmul.f32 %v4337_v45, %v92_v16 }
  0xb3   :  { %v515_v1 = vadd.f32 %v4362_v60, %v429_v23  ;;  %v575_v38 = vmax.f32 %v511_v17, 0.0  ;;  %v514_v43 = vadd.f32 %v4365_v61, %v428_v19  ;;  %v574_v48 = vmax.f32 %v510_v18, 0.0  ;;  %v3833_v23 = vld [vmem:[#allocation2 + $0x200] ss:$16 sps:$4 sm:$0xff]  }
  0xb4   :  { %v270_v0 = vpop.permute.xlu0 %269  ;;  %v581_v3 = vmax.f32 %v517_v27, 0.0  ;;  %v576_v15 = vmax.f32 %v4372_v10, 0.0 }
  0xb5   :  { %v274_v51 = vpop.permute.xlu1 %273  ;;  %v368_v52 = vmul.f32 %v4317_v39, %v270_v0  ;;  %v369_v53 = vmul.f32 %v4320_v40, %v270_v0  ;;  %v370_v54 = vmul.f32 %v4324_v41, %v270_v0  ;;  %v371_v55 = vmul.f32 %v4328_v42, %v270_v0 }
  0xb6   :  { %v372_v56 = vmul.f32 %v4317_v39, %v274_v51  ;;  %v373_v57 = vmul.f32 %v4320_v40, %v274_v51  ;;  %v374_v58 = vmul.f32 %v4324_v41, %v274_v51  ;;  %v375_v59 = vmul.f32 %v4328_v42, %v274_v51 }
  0xb7   :  { %v432_v62 = vadd.f32 %v368_v52, %v204_v32  ;;  %v4405_v63 = vadd.f32 %v370_v54, %v206_v28  ;;  %v435_v2 = vadd.f32 %v371_v55, %v207_v29  ;;  %v433_v7 = vadd.f32 %v369_v53, %v205_v37 }
  0xb8   :  { %v437_v4 = vadd.f32 %v373_v57, %v209_v31  ;;  %v4407_v5 = vadd.f32 %v374_v58, %v210_v24  ;;  %v439_v6 = vadd.f32 %v375_v59, %v211_v25  ;;  %v286_v8 = vpop.permute.xlu0 %285  ;;  %v436_v9 = vadd.f32 %v372_v56, %v208_v30  ;;  %v3845_v24 = vld [vmem:[#allocation2 + $0x208] ss:$16 sps:$4 sm:$0xff]   ;;  %v3838_v30 = vld [vmem:[#allocation2 + $0x224] ss:$16 sps:$4 sm:$0xff]  }
  0xb9   :  { %v4410_v12 = vadd.f32 %v4351_v50, %v435_v2  ;;  %v579_v13 = vmax.f32 %v515_v1, 0.0  ;;  %v578_v14 = vmax.f32 %v514_v43, 0.0  ;;  %v4417_v18 = vmul.f32 %v4324_v41, %v286_v8  ;;  %v3853_v1 = vld [vmem:[#allocation2 + $0x22c] ss:$16 sps:$4 sm:$0xff]  }
  0xba   :  { %v4414_v16 = vadd.f32 %v4351_v50, %v439_v6  ;;  %v102_v17 = vpop.permute.xlu1 %101  ;;  %v4420_v19 = vmul.f32 %v4328_v42, %v286_v8  ;;  %v4423_v22 = vmul.f32 %v4317_v39, %v286_v8  ;;  %v577_v25 = vmax.f32 %v4375_v11, 0.0 }
  0xbb   :  { %v639_v20 = vpack.c.bf16 %v579_v13, %v575_v38  ;;  %v638_v21 = vpack.c.bf16 %v578_v14, %v574_v48  ;;  %v214_v10 = vmul.f32 %v4341_v46, %v102_v17  ;;  %v215_v27 = vmul.f32 %v4345_v47, %v102_v17 }
  0xbc   :  { %v519_v28 = vadd.f32 %v4362_v60, %v433_v7  ;;  %v523_v29 = vadd.f32 %v4362_v60, %v437_v4  ;;  %v580_v31 = vmax.f32 %v4386_v26, 0.0  ;;  %v518_v32 = vadd.f32 %v4365_v61, %v432_v62  ;;  %v3836_v62 = vld [vmem:[#allocation2 + $0x220] ss:$16 sps:$4 sm:$0xff]   ;;  %v3841_v7 = vld [vmem:[#allocation2 + $0x244] ss:$16 sps:$4 sm:$0xff]  }
  0xbd   :  { %1349 = vmatprep.mubr.bf16.mxu0 %v639_v20  ;;  %1575 = vmatprep.mubr.bf16.mxu1 %v639_v20  ;;  %v522_v37 = vadd.f32 %v4365_v61, %v436_v9  ;;  %v107_v0 = vpop.permute.xlu0 %106  ;;  %v4433_v11 = vpack.c.bf16 %v581_v3, %v577_v25  ;;  %v212_v38 = vmul.f32 %v4334_v44, %v102_v17  ;;  %v3851_v25 = vld [vmem:[#allocation2 + $0x228] ss:$16 sps:$4 sm:$0xff]  }
  0xbe   :  { %1350 = vmatmul.mubr.bf16.vlgmr.msra.gmra.mrb[0].mxu0 %v638_v21  ;;  %1576 = vmatmul.mubr.bf16.vlgmr.msra.gmra.mrb[0].mxu1 %v638_v21  ;;  %v4437_v43 = vmul.f32 %v4320_v40, %v286_v8  ;;  %v583_v48 = vmax.f32 %v519_v28, 0.0  ;;  %v587_v51 = vmax.f32 %v523_v29, 0.0  ;;  %v582_v52 = vmax.f32 %v518_v32, 0.0  ;;  %v3839_v29 = vld [vmem:[#allocation2 + $0x240] ss:$16 sps:$4 sm:$0xff]  }
  0xbf   :  { %5070 = vst [vmem:[#allocation15_spill] sm:$0xff] %v4433_v11  ;;  %v278_v26 = vpop.permute.xlu1 %277  ;;  %v586_v53 = vmax.f32 %v522_v37, 0.0  ;;  %v218_v54 = vmul.f32 %v4341_v46, %v107_v0  ;;  %v219_v55 = vmul.f32 %v4345_v47, %v107_v0  ;;  %1431 = vmatpush1.bf16.msra.mxu0 %v3833_v23  ;;  %1657 = vmatpush1.bf16.msra.mxu1 %v3845_v24 }
  0xc0   :  { %v376_v56 = vmul.f32 %v4317_v39, %v278_v26  ;;  %v377_v57 = vmul.f32 %v4320_v40, %v278_v26  ;;  %v378_v58 = vmul.f32 %v4324_v41, %v278_v26  ;;  %v379_v59 = vmul.f32 %v4328_v42, %v278_v26  ;;  %1432 = vmatprep.subr.bf16.mxu0 %v3838_v30  ;;  %v3859_v26 = vld [vmem:[#allocation2 + $0x24c] ss:$16 sps:$4 sm:$0xff]  }
  0xc1   :  { %v213_v2 = vmul.f32 %v4337_v45, %v102_v17  ;;  %v643_v3 = vpack.c.bf16 %v587_v51, %v583_v48  ;;  %v216_v4 = vmul.f32 %v4334_v44, %v107_v0  ;;  %v112_v6 = vpop.permute.xlu0 %111  ;;  %1658 = vmatprep.subr.bf16.mxu1 %v3853_v1  ;;  %v4447_v8 = vpack.c.bf16 %v580_v31, %v576_v15 }
  0xc2   :  { %v4449_v9 = vadd.f32 %v378_v58, %v214_v10  ;;  %v443_v13 = vadd.f32 %v379_v59, %v215_v27  ;;  %v642_v14 = vpack.c.bf16 %v586_v53, %v582_v52  ;;  %v217_v20 = vmul.f32 %v4337_v45, %v107_v0  ;;  %v3844_v0 = vld [vmem:[#allocation2 + $0x264] ss:$16 sps:$4 sm:$0xff]   ;;  %v3857_v58 = vld [vmem:[#allocation2 + $0x248] ss:$16 sps:$4 sm:$0xff]  }
  0xc3   :  { %5071 = vst [vmem:[#allocation16_spill] sm:$0xff] %v4447_v8  ;;  %v440_v21 = vadd.f32 %v376_v56, %v212_v38  ;;  %v441_v23 = vadd.f32 %v377_v57, %v213_v2  ;;  %1359 = vmatprep.mubr.bf16.mxu0 %v643_v3  ;;  %1585 = vmatprep.mubr.bf16.mxu1 %v643_v3  ;;  %v282_v24 = vpop.permute.xlu1 %281  ;;  %v3842_v3 = vld [vmem:[#allocation2 + $0x260] ss:$16 sps:$4 sm:$0xff]  }
  0xc4   :  { %v222_v17 = vmul.f32 %v4341_v46, %v112_v6  ;;  %v4454_v28 = vadd.f32 %v4351_v50, %v443_v13  ;;  %v380_v15 = vmul.f32 %v4317_v39, %v282_v24  ;;  %v381_v10 = vmul.f32 %v4320_v40, %v282_v24  ;;  %1433 = vmatpush1.bf16.msra.mxu0 %v3836_v62 }
  0xc5   :  { %v382_v27 = vmul.f32 %v4324_v41, %v282_v24  ;;  %v383_v30 = vmul.f32 %v4328_v42, %v282_v24  ;;  %v220_v31 = vmul.f32 %v4334_v44, %v112_v6  ;;  %v221_v32 = vmul.f32 %v4337_v45, %v112_v6  ;;  %1434 = vmatprep.subr.bf16.mxu0 %v3841_v7  ;;  %v4465_v51 = vpop.permute.xlu0 %126  ;;  %v3850_v7 = vld [vmem:[#allocation2 + $0x284] ss:$16 sps:$4 sm:$0xff]  }
  0xc6   :  { %v223_v37 = vmul.f32 %v4345_v47, %v112_v6  ;;  %1360 = vmatmul.mubr.bf16.gmra.mrb[4].mxu0 %v642_v14  ;;  %1586 = vmatmul.mubr.bf16.gmra.mrb[4].mxu1 %v642_v14  ;;  %v444_v1 = vadd.f32 %v380_v15, %v216_v4  ;;  %v445_v38 = vadd.f32 %v381_v10, %v217_v20 }
  0xc7   :  { %v4463_v48 = vadd.f32 %v382_v27, %v218_v54  ;;  %v447_v52 = vadd.f32 %v383_v30, %v219_v55  ;;  %v4468_v53 = vadd.f32 %v4417_v18, %v222_v17  ;;  %v527_v57 = vadd.f32 %v4362_v60, %v441_v23  ;;  %1659 = vmatpush1.bf16.msra.mxu1 %v3851_v25 }
  0xc8   :  { %v451_v56 = vadd.f32 %v4420_v19, %v223_v37  ;;  %v117_v59 = vpop.permute.xlu1 %116  ;;  %v531_v62 = vadd.f32 %v4362_v60, %v445_v38  ;;  %v526_v2 = vadd.f32 %v4365_v61, %v440_v21  ;;  %v530_v54 = vadd.f32 %v4365_v61, %v444_v1  ;;  %1435 = vmatpush1.bf16.msra.mxu0 %v3839_v29 }
  0xc9   :  { %v585_v55 = vmax.f32 %v4410_v12, 0.0  ;;  %v4477_v18 = vadd.f32 %v4351_v50, %v447_v52  ;;  %v226_v19 = vmul.f32 %v4341_v46, %v117_v59  ;;  %v448_v4 = vadd.f32 %v4423_v22, %v220_v31  ;;  %1436 = vmatprep.subr.bf16.mxu0 %v3844_v0  ;;  %1660 = vmatprep.subr.bf16.mxu1 %v3859_v26  ;;  %v3856_v26 = vld [vmem:[#allocation2 + $0x2a4] ss:$16 sps:$4 sm:$0xff]   ;;  %v3862_v52 = vld [vmem:[#allocation2 + $0x26c] ss:$16 sps:$4 sm:$0xff]  }
  0xca   :  { %v449_v6 = vadd.f32 %v4437_v43, %v221_v32  ;;  %v227_v13 = vmul.f32 %v4345_v47, %v117_v59  ;;  %v4484_v14 = vadd.f32 %v4351_v50, %v451_v56  ;;  %v591_v20 = vmax.f32 %v527_v57, 0.0  ;;  %v4486_v23 = vpop.permute.xlu0 %301 }
  0xcb   :  { %v595_v21 = vmax.f32 %v531_v62, 0.0  ;;  %v590_v12 = vmax.f32 %v526_v2, 0.0  ;;  %v594_v24 = vmax.f32 %v530_v54, 0.0  ;;  %v4490_v17 = vmul.f32 %v4341_v46, %v4465_v51  ;;  %1661 = vmatpush1.bf16.msra.mxu1 %v3857_v58  ;;  %v3860_v58 = vld [vmem:[#allocation2 + $0x268] ss:$16 sps:$4 sm:$0xff]  }
  0xcc   :  { %v589_v22 = vmax.f32 %v4414_v16, 0.0  ;;  %v224_v43 = vmul.f32 %v4334_v44, %v117_v59  ;;  %v225_v25 = vmul.f32 %v4337_v45, %v117_v59  ;;  %v4497_v10 = vmul.f32 %v4345_v47, %v4465_v51  ;;  %1437 = vmatpush1.bf16.msra.mxu0 %v3842_v3  ;;  %v3848_v16 = vld [vmem:[#allocation2 + $0x280] ss:$16 sps:$4 sm:$0xff]   ;;  %1662 = vmatprep.subr.bf16.mxu1 %v3862_v52 }
  0xcd   :  { %v647_v15 = vpack.c.bf16 %v595_v21, %v591_v20  ;;  %v290_v27 = vpop.permute.xlu1 %289  ;;  %v646_v29 = vpack.c.bf16 %v594_v24, %v590_v12  ;;  %v535_v30 = vadd.f32 %v4362_v60, %v449_v6  ;;  %v534_v31 = vadd.f32 %v4365_v61, %v448_v4  ;;  %1438 = vmatprep.subr.bf16.mxu0 %v3850_v7  ;;  %v3868_v4 = vld [vmem:[#allocation2 + $0x28c] ss:$16 sps:$4 sm:$0xff]   ;;  %v3854_v21 = vld [vmem:[#allocation2 + $0x2a0] ss:$16 sps:$4 sm:$0xff]  }
  0xce   :  { %v402_v32 = vmul.f32 %v4324_v41, %v4486_v23  ;;  %v388_v37 = vmul.f32 %v4317_v39, %v290_v27  ;;  %v389_v0 = vmul.f32 %v4320_v40, %v290_v27  ;;  %v390_v1 = vmul.f32 %v4324_v41, %v290_v27 }
  0xcf   :  { %v391_v38 = vmul.f32 %v4328_v42, %v290_v27  ;;  %1369 = vmatprep.mubr.bf16.mxu0 %v647_v15  ;;  %1595 = vmatprep.mubr.bf16.mxu1 %v647_v15  ;;  %v403_v56 = vmul.f32 %v4328_v42, %v4486_v23  ;;  %v132_v57 = vpop.permute.xlu0 %131  ;;  %v4509_v59 = vpack.c.bf16 %v589_v22, %v585_v55  ;;  %v599_v6 = vmax.f32 %v535_v30, 0.0  ;;  %v3866_v30 = vld [vmem:[#allocation2 + $0x288] ss:$16 sps:$4 sm:$0xff]  }
  0xd0   :  { %1370 = vmatmul.mubr.bf16.gmra.mrb[8].mxu0 %v646_v29  ;;  %v452_v62 = vadd.f32 %v388_v37, %v224_v43  ;;  %v453_v2 = vadd.f32 %v389_v0, %v225_v25  ;;  %v4511_v54 = vadd.f32 %v390_v1, %v226_v19  ;;  %1596 = vmatmul.mubr.bf16.gmra.mrb[8].mxu1 %v646_v29  ;;  %v598_v19 = vmax.f32 %v534_v31, 0.0 }
  0xd1   :  { %5072 = vst [vmem:[#allocation17_spill] sm:$0xff] %v4509_v59  ;;  %v455_v3 = vadd.f32 %v391_v38, %v227_v13  ;;  %v238_v7 = vmul.f32 %v4341_v46, %v132_v57  ;;  %v239_v20 = vmul.f32 %v4345_v47, %v132_v57  ;;  %1439 = vmatpush1.bf16.msra.mxu0 %v3848_v16  ;;  %v3865_v13 = vld [vmem:[#allocation2 + $0x2c4] ss:$16 sps:$4 sm:$0xff]  }
  0xd2   :  { %v122_v24 = vpop.permute.xlu1 %121  ;;  %v539_v55 = vadd.f32 %v4362_v60, %v453_v2  ;;  %v538_v22 = vadd.f32 %v4365_v61, %v452_v62  ;;  %1440 = vmatprep.subr.bf16.mxu0 %v3856_v26  ;;  %v400_v15 = vmul.f32 %v4317_v39, %v4486_v23  ;;  %v236_v27 = vmul.f32 %v4334_v44, %v132_v57 }
  0xd3   :  { %v4516_v12 = vadd.f32 %v4351_v50, %v455_v3  ;;  %v230_v43 = vmul.f32 %v4341_v46, %v122_v24  ;;  %v231_v25 = vmul.f32 %v4345_v47, %v122_v24  ;;  %v147_v29 = vpop.permute.xlu0 %146  ;;  %1663 = vmatpush1.bf16.msra.mxu1 %v3860_v58  ;;  %v4527_v16 = vmul.f32 %v4334_v44, %v4465_v51 }
  0xd4   :  { %v4531_v31 = vmul.f32 %v4337_v45, %v4465_v51  ;;  %v603_v37 = vmax.f32 %v539_v55, 0.0  ;;  %v602_v0 = vmax.f32 %v538_v22, 0.0  ;;  %1664 = vmatprep.subr.bf16.mxu1 %v3868_v4  ;;  %v401_v1 = vmul.f32 %v4320_v40, %v4486_v23  ;;  %v3869_v22 = vld [vmem:[#allocation2 + $0x2a8] ss:$16 sps:$4 sm:$0xff]  }
  0xd5   :  { %v237_v38 = vmul.f32 %v4337_v45, %v132_v57  ;;  %v4536_v26 = vadd.f32 %v402_v32, %v238_v7  ;;  %v467_v52 = vadd.f32 %v403_v56, %v239_v20  ;;  %1441 = vmatpush1.bf16.msra.mxu0 %v3854_v21  ;;  %v228_v58 = vmul.f32 %v4334_v44, %v122_v24  ;;  %v3863_v32 = vld [vmem:[#allocation2 + $0x2c0] ss:$16 sps:$4 sm:$0xff]   ;;  %v3871_v56 = vld [vmem:[#allocation2 + $0x2ac] ss:$16 sps:$4 sm:$0xff]  }
  0xd6   :  { %v651_v62 = vpack.c.bf16 %v603_v37, %v599_v6  ;;  %v650_v2 = vpack.c.bf16 %v602_v0, %v598_v19  ;;  %v4540_v3 = vmul.f32 %v4341_v46, %v147_v29  ;;  %1442 = vmatprep.subr.bf16.mxu0 %v3865_v13  ;;  %v229_v51 = vmul.f32 %v4337_v45, %v122_v24 }
  0xd7   :  { %v294_v4 = vpop.permute.xlu1 %293  ;;  %v464_v55 = vadd.f32 %v400_v15, %v236_v27  ;;  %v4544_v23 = vadd.f32 %v4351_v50, %v467_v52  ;;  %v152_v57 = vpop.permute.xlu0 %151  ;;  %1665 = vmatpush1.bf16.msra.mxu1 %v3866_v30  ;;  %v4548_v7 = vadd.f32 %v4348_v49, %v4405_v63  ;;  %v465_v19 = vadd.f32 %v401_v1, %v237_v38  ;;  %v3874_v63 = vld [vmem:[#allocation2 + $0x2e4] ss:$16 sps:$4 sm:$0xff]   ;;  %v3872_v38 = vld [vmem:[#allocation2 + $0x2e0] ss:$16 sps:$4 sm:$0xff]  }
  0xd8   :  { %v392_v6 = vmul.f32 %v4317_v39, %v294_v4  ;;  %v393_v20 = vmul.f32 %v4320_v40, %v294_v4  ;;  %v394_v21 = vmul.f32 %v4324_v41, %v294_v4  ;;  %v395_v24 = vmul.f32 %v4328_v42, %v294_v4  ;;  %1379 = vmatprep.mubr.bf16.mxu0 %v651_v62  ;;  %v3877_v4 = vld [vmem:[#allocation2 + $0x2cc] ss:$16 sps:$4 sm:$0xff]  }
  0xd9   :  { %1605 = vmatprep.mubr.bf16.mxu1 %v651_v62  ;;  %1380 = vmatmul.mubr.bf16.gmra.mrb[12].mxu0 %v650_v2  ;;  %v4555_v13 = vmul.f32 %v4334_v44, %v147_v29  ;;  %v254_v15 = vmul.f32 %v4341_v46, %v152_v57  ;;  %v4562_v62 = vmul.f32 %v4337_v45, %v147_v29 }
  0xda   :  { %v456_v30 = vadd.f32 %v392_v6, %v228_v58  ;;  %v457_v37 = vadd.f32 %v393_v20, %v229_v51  ;;  %v4559_v0 = vadd.f32 %v394_v21, %v230_v43  ;;  %v459_v52 = vadd.f32 %v395_v24, %v231_v25  ;;  %1606 = vmatmul.mubr.bf16.gmra.mrb[12].mxu1 %v650_v2  ;;  %v3880_v20 = vld [vmem:[#allocation2 + $0x2ec] ss:$16 sps:$4 sm:$0xff]  }
  0xdb   :  { %v298_v34 = vpop.permute.xlu1 %297  ;;  %v4565_v1 = vmul.f32 %v4345_v47, %v147_v29  ;;  %1443 = vmatpush1.bf16.msra.mxu0 %v3863_v32  ;;  %1666 = vmatprep.subr.bf16.mxu1 %v3871_v56  ;;  %v524_v27 = vadd.f32 %v4348_v49, %v4407_v5  ;;  %v597_v58 = vmax.f32 %v4477_v18, 0.0  ;;  %v3875_v29 = vld [vmem:[#allocation2 + $0x2c8] ss:$16 sps:$4 sm:$0xff]   ;;  %v4581_v5 = vadd.f32 %v4362_v60, %v465_v19 }
  0xdc   :  { %v4571_v43 = vadd.f32 %v4351_v50, %v459_v52  ;;  %v396_v25 = vmul.f32 %v4317_v39, %v298_v34  ;;  %v397_v2 = vmul.f32 %v4320_v40, %v298_v34  ;;  %v398_v51 = vmul.f32 %v4324_v41, %v298_v34  ;;  %v4576_v6 = vpop.permute.xlu0 %317  ;;  %1667 = vmatpush1.bf16.msra.mxu1 %v3869_v22 }
  0xdd   :  { %v399_v32 = vmul.f32 %v4328_v42, %v298_v34  ;;  %v543_v56 = vadd.f32 %v4362_v60, %v457_v37  ;;  %v4584_v18 = vadd.f32 %v4365_v61, %v464_v55  ;;  %1444 = vmatprep.subr.bf16.mxu0 %v3874_v63  ;;  %v542_v22 = vadd.f32 %v4365_v61, %v456_v30  ;;  %v3883_v34 = vld [vmem:[#allocation2 + $0x304] ss:$16 sps:$4 sm:$0xff]  }
  0xde   :  { %v460_v21 = vadd.f32 %v396_v25, %v4527_v16  ;;  %v461_v24 = vadd.f32 %v397_v2, %v4531_v31  ;;  %v4589_v52 = vadd.f32 %v398_v51, %v4490_v17  ;;  %1668 = vmatprep.subr.bf16.mxu1 %v3877_v4  ;;  %v4594_v19 = vmul.f32 %v4334_v44, %v152_v57  ;;  %v3881_v16 = vld [vmem:[#allocation2 + $0x300] ss:$16 sps:$4 sm:$0xff]   ;;  %v3878_v4 = vld [vmem:[#allocation2 + $0x2e8] ss:$16 sps:$4 sm:$0xff]  }
  0xdf   :  { %v463_v37 = vadd.f32 %v399_v32, %v4497_v10  ;;  %v255_v55 = vmul.f32 %v4345_v47, %v152_v57  ;;  %v418_v63 = vmul.f32 %v4324_v41, %v4576_v6  ;;  %1445 = vmatpush1.bf16.msra.mxu0 %v3872_v38  ;;  %v4602_v30 = vmul.f32 %v4337_v45, %v152_v57  ;;  %v3886_v32 = vld [vmem:[#allocation2 + $0x30c] ss:$16 sps:$4 sm:$0xff]  }
  0xe0   :  { %v137_v31 = vpop.permute.xlu1 %136  ;;  %v547_v17 = vadd.f32 %v4362_v60, %v461_v24  ;;  %v546_v25 = vadd.f32 %v4365_v61, %v460_v21  ;;  %v419_v10 = vmul.f32 %v4328_v42, %v4576_v6  ;;  %1669 = vmatpush1.bf16.msra.mxu1 %v3875_v29  ;;  %v607_v38 = vmax.f32 %v543_v56, 0.0  ;;  %1446 = vmatprep.subr.bf16.mxu0 %v3883_v34 }
  0xe1   :  { %5073 = vst [vmem:[#allocation18_spill] sm:$0xff] %v4602_v30  ;;  %v4607_v2 = vadd.f32 %v4351_v50, %v463_v37  ;;  %v242_v51 = vmul.f32 %v4341_v46, %v137_v31  ;;  %1670 = vmatprep.subr.bf16.mxu1 %v3880_v20  ;;  %v584_v24 = vmax.f32 %v4548_v7, 0.0  ;;  %v243_v21 = vmul.f32 %v4345_v47, %v137_v31 }
  0xe2   :  { %v611_v57 = vmax.f32 %v547_v17, 0.0  ;;  %v606_v36 = vmax.f32 %v542_v22, 0.0  ;;  %v610_v35 = vmax.f32 %v546_v25, 0.0  ;;  %v240_v29 = vmul.f32 %v4334_v44, %v137_v31 }
  0xe3   :  { %v4613_v59 = vadd.f32 %v418_v63, %v254_v15  ;;  %v483_v37 = vadd.f32 %v419_v10, %v255_v55  ;;  %1447 = vmatpush1.bf16.msra.mxu0 %v3881_v16  ;;  %v588_v8 = vmax.f32 %v524_v27, 0.0  ;;  %v241_v56 = vmul.f32 %v4337_v45, %v137_v31  ;;  %v3884_v15 = vld [vmem:[#allocation2 + $0x308] ss:$16 sps:$4 sm:$0xff]   ;;  %v3892_v63 = vld [vmem:[#allocation5 + $0xc] ss:$16 sps:$4 sm:$0xff]  }
  0xe4   :  { %v655_v20 = vpack.c.bf16 %v611_v57, %v607_v38  ;;  %v654_v11 = vpack.c.bf16 %v610_v35, %v606_v36  ;;  %1671 = vmatpush1.bf16.msra.mxu1 %v3878_v4  ;;  %v5074_v7 = vmax.f32 %v4454_v28, 0.0  ;;  %v615_v34 = vmax.f32 %v4581_v5, 0.0  ;;  %2511 = vmatprep.subr.bf16.mxu0 %v3889_v33 }
  0xe5   :  { %v306_v17 = vpop.permute.xlu1 %305  ;;  %v4621_v22 = vadd.f32 %v4351_v50, %v483_v37  ;;  %1672 = vmatprep.subr.bf16.mxu1 %v3886_v32  ;;  %v4624_v55 = vpack.c.bf16 %v588_v8, %v584_v24  ;;  %v528_v27 = vadd.f32 %v4348_v49, %v4449_v9  ;;  %v4634_v8 = vmul.f32 %v4317_v39, %v4576_v6 }
  0xe6   :  { %v4618_v30 = vpack.c.bf16 %v597_v58, %v5074_v7  ;;  %v404_v35 = vmul.f32 %v4317_v39, %v306_v17  ;;  %v405_v36 = vmul.f32 %v4320_v40, %v306_v17  ;;  %v406_v28 = vmul.f32 %v4324_v41, %v306_v17  ;;  %1389 = vmatprep.mubr.bf16.mxu0 %v655_v20 }
  0xe7   :  { %v407_v58 = vmul.f32 %v4328_v42, %v306_v17  ;;  %1615 = vmatprep.mubr.bf16.mxu1 %v655_v20  ;;  %1390 = vmatmul.mubr.bf16.gmra.mrb[16].mxu0 %v654_v11  ;;  %v614_v5 = vmax.f32 %v4584_v18, 0.0  ;;  %v532_v33 = vadd.f32 %v4348_v49, %v4463_v48  ;;  %v592_v9 = vmax.f32 %v528_v27, 0.0 }
  0xe8   :  { %v468_v16 = vadd.f32 %v404_v35, %v240_v29  ;;  %v469_v31 = vadd.f32 %v405_v36, %v241_v56  ;;  %v470_v25 = vadd.f32 %v406_v28, %v242_v51  ;;  %1616 = vmatmul.mubr.bf16.gmra.mrb[16].mxu1 %v654_v11  ;;  %v601_v38 = vmax.f32 %v4484_v14, 0.0 }
  0xe9   :  { %v471_v10 = vadd.f32 %v407_v58, %v243_v21  ;;  %1673 = vmatpush1.bf16.msra.mxu1 %v3884_v15  ;;  %v596_v4 = vmax.f32 %v532_v33, 0.0  ;;  %v605_v32 = vmax.f32 %v4516_v12, 0.0  ;;  %v536_v24 = vadd.f32 %v4348_v49, %v4468_v53 }
  0xea   :  { %v142_v57 = vpop.permute.xlu1 %141  ;;  %v555_v48 = vadd.f32 %v4362_v60, %v469_v31  ;;  %v554_v29 = vadd.f32 %v4365_v61, %v468_v16  ;;  %v540_v51 = vadd.f32 %v4348_v49, %v4511_v54  ;;  %2737 = vmatprep.subr.bf16.mxu1 %v3892_v63  ;;  %v609_v15 = vmax.f32 %v4571_v43, 0.0 }
  0xeb   :  { %v557_v18 = vadd.f32 %v4351_v50, %v471_v10  ;;  %v244_v11 = vmul.f32 %v4334_v44, %v142_v57  ;;  %v245_v14 = vmul.f32 %v4337_v45, %v142_v57  ;;  %v246_v12 = vmul.f32 %v4341_v46, %v142_v57 }
  0xec   :  { %v247_v21 = vmul.f32 %v4345_v47, %v142_v57  ;;  %v619_v53 = vmax.f32 %v555_v48, 0.0  ;;  %v618_v37 = vmax.f32 %v554_v29, 0.0  ;;  %v4652_v56 = vpack.c.bf16 %v596_v4, %v592_v9 }
  0xed   :  { %v4654_v20 = vpack.c.bf16 %v605_v32, %v601_v38  ;;  %v600_v7 = vmax.f32 %v536_v24, 0.0  ;;  %v604_v17 = vmax.f32 %v540_v51, 0.0  ;;  %v613_v54 = vmax.f32 %v4607_v2, 0.0 }
  0xee   :  { %v659_v27 = vpack.c.bf16 %v619_v53, %v615_v34  ;;  %v658_v35 = vpack.c.bf16 %v618_v37, %v614_v5  ;;  %v544_v36 = vadd.f32 %v4348_v49, %v4559_v0  ;;  %v548_v28 = vadd.f32 %v4348_v49, %v4589_v52 }
  0xef   :  { %v310_v58 = vpop.permute.xlu1 %309  ;;  %v4662_v63 = vpack.c.bf16 %v604_v17, %v600_v7  ;;  %v4664_v33 = vpack.c.bf16 %v613_v54, %v609_v15  ;;  %v617_v9 = vmax.f32 %v4544_v23, 0.0  ;;  %v621_v16 = vmax.f32 %v557_v18, 0.0 }
  0xf0   :  { %v408_v43 = vmul.f32 %v4317_v39, %v310_v58  ;;  %v409_v2 = vmul.f32 %v4320_v40, %v310_v58  ;;  %v410_v34 = vmul.f32 %v4324_v41, %v310_v58  ;;  %v411_v5 = vmul.f32 %v4328_v42, %v310_v58  ;;  %1399 = vmatprep.mubr.bf16.mxu0 %v659_v27 }
  0xf1   :  { %1625 = vmatprep.mubr.bf16.mxu1 %v659_v27  ;;  %1400 = vmatmul.mubr.bf16.gmra.mrb[20].mxu0 %v658_v35  ;;  %v608_v0 = vmax.f32 %v544_v36, 0.0  ;;  %v612_v52 = vmax.f32 %v548_v28, 0.0  ;;  %v4671_v31 = vpack.c.bf16 %v621_v16, %v617_v9  ;;  %v552_v10 = vadd.f32 %v4348_v49, %v4536_v26 }
  0xf2   :  { %v472_v23 = vadd.f32 %v408_v43, %v244_v11  ;;  %v473_v4 = vadd.f32 %v409_v2, %v245_v14  ;;  %v474_v38 = vadd.f32 %v410_v34, %v246_v12  ;;  %v475_v32 = vadd.f32 %v411_v5, %v247_v21  ;;  %1626 = vmatmul.mubr.bf16.gmra.mrb[20].mxu1 %v658_v35 }
  0xf3   :  { %v314_v24 = vpop.permute.xlu1 %313  ;;  %v4675_v18 = vpack.c.bf16 %v612_v52, %v608_v0  ;;  %v556_v57 = vadd.f32 %v4348_v49, %v470_v25  ;;  %v616_v48 = vmax.f32 %v552_v10, 0.0  ;;  %v4680_v29 = vadd.f32 %v4348_v49, %v4613_v59 }
  0xf4   :  { %v561_v51 = vadd.f32 %v4351_v50, %v475_v32  ;;  %v412_v53 = vmul.f32 %v4317_v39, %v314_v24  ;;  %v413_v26 = vmul.f32 %v4320_v40, %v314_v24  ;;  %v414_v11 = vmul.f32 %v4324_v41, %v314_v24 }
  0xf5   :  { %v417_v14 = vmul.f32 %v4320_v40, %v4576_v6  ;;  %v415_v12 = vmul.f32 %v4328_v42, %v314_v24  ;;  %v559_v25 = vadd.f32 %v4362_v60, %v473_v4  ;;  %v620_v21 = vmax.f32 %v556_v57, 0.0 }
  0xf6   :  { %v476_v37 = vadd.f32 %v412_v53, %v4555_v13  ;;  %v477_v59 = vadd.f32 %v413_v26, %v4562_v62  ;;  %v478_v7 = vadd.f32 %v414_v11, %v4540_v3  ;;  %v558_v17 = vadd.f32 %v4365_v61, %v472_v23  ;;  %v5075_v62 = vld [vmem:[#allocation18_spill] sm:$0xff] }
  0xf7   :  { %v479_v15 = vadd.f32 %v415_v12, %v4565_v1  ;;  %v4695_v54 = vpack.c.bf16 %v620_v21, %v616_v48  ;;  %v560_v36 = vadd.f32 %v4348_v49, %v474_v38  ;;  %v480_v13 = vadd.f32 %v4634_v8, %v4594_v19 }
  0xf8   :  { %v157_v27 = vpop.permute.xlu1 %156  ;;  %v563_v6 = vadd.f32 %v4362_v60, %v477_v59  ;;  %v562_v35 = vadd.f32 %v4365_v61, %v476_v37  ;;  %v564_v28 = vadd.f32 %v4348_v49, %v478_v7  ;;  %v481_v3 = vadd.f32 %v417_v14, %v5075_v62  ;;  %v3901_v62 = vld [vmem:[#allocation5 + $0x44] ss:$16 sps:$4 sm:$0xff]  }
  0xf9   :  { %v565_v58 = vadd.f32 %v4351_v50, %v479_v15  ;;  %v258_v1 = vmul.f32 %v4341_v46, %v157_v27  ;;  %v623_v9 = vmax.f32 %v559_v25, 0.0  ;;  %v622_v43 = vmax.f32 %v558_v17, 0.0 }
  0xfa   :  { %v627_v16 = vmax.f32 %v563_v6, 0.0  ;;  %v626_v2 = vmax.f32 %v562_v35, 0.0  ;;  %v625_v34 = vmax.f32 %v561_v51, 0.0  ;;  %v624_v0 = vmax.f32 %v560_v36, 0.0  ;;  %v5077_v35 = vld [vmem:[#allocation16_spill] sm:$0xff]  ;;  %v5078_v36 = vld [vmem:[#allocation17_spill] sm:$0xff] }
  0xfb   :  { %v629_v5 = vmax.f32 %v565_v58, 0.0  ;;  %v628_v52 = vmax.f32 %v564_v28, 0.0  ;;  %v256_v10 = vmul.f32 %v4334_v44, %v157_v27  ;;  %v257_v19 = vmul.f32 %v4337_v45, %v157_v27  ;;  %v3893_v28 = vld [vmem:[#allocation5 + $0x20] ss:$16 sps:$4 sm:$0xff]  }
  0xfc   :  { %v663_v23 = vpack.c.bf16 %v627_v16, %v623_v9  ;;  %v662_v4 = vpack.c.bf16 %v626_v2, %v622_v43  ;;  %v259_v8 = vmul.f32 %v4345_v47, %v157_v27  ;;  %v567_v44 = vadd.f32 %v4362_v60, %v481_v3  ;;  %v3904_v3 = vld [vmem:[#allocation5 + $0x4c] ss:$16 sps:$4 sm:$0xff]   ;;  %v3899_v58 = vld [vmem:[#allocation5 + $0x40] ss:$16 sps:$4 sm:$0xff]   ;;  %v3907_v9 = vld [vmem:[#allocation5 + $0x64] ss:$16 sps:$4 sm:$0xff]  }
  0xfd   :  { %v322_v38 = vpop.permute.xlu1 %321  ;;  %v4709_v32 = vpack.c.bf16 %v629_v5, %v625_v34  ;;  %v4711_v46 = vpack.c.bf16 %v628_v52, %v624_v0  ;;  %v566_v45 = vadd.f32 %v4365_v61, %v480_v13  ;;  %v633_v14 = vmax.f32 %v4621_v22, 0.0  ;;  %v3895_v22 = vld [vmem:[#allocation5 + $0x24] ss:$16 sps:$4 sm:$0xff]   ;;  %v3896_v13 = vld [vmem:[#allocation5 + $0x28] ss:$16 sps:$4 sm:$0xff]  }
  0xfe   :  { %v420_v24 = vmul.f32 %v4317_v39, %v322_v38  ;;  %v421_v57 = vmul.f32 %v4320_v40, %v322_v38  ;;  %v422_v48 = vmul.f32 %v4324_v41, %v322_v38  ;;  %v423_v51 = vmul.f32 %v4328_v42, %v322_v38  ;;  %1409 = vmatprep.mubr.bf16.mxu0 %v663_v23  ;;  %v3910_v16 = vld [vmem:[#allocation5 + $0x6c] ss:$16 sps:$4 sm:$0xff]   ;;  %v3905_v43 = vld [vmem:[#allocation5 + $0x60] ss:$16 sps:$4 sm:$0xff]   ;;  %v3908_v2 = vld [vmem:[#allocation5 + $0x68] ss:$16 sps:$4 sm:$0xff]  }
  0xff   :  { %1635 = vmatprep.mubr.bf16.mxu1 %v663_v23  ;;  %1410 = vmatmul.mubr.bf16.gmra.mrb[24].mxu0 %v662_v4  ;;  %v631_v12 = vmax.f32 %v567_v44, 0.0  ;;  %v630_v25 = vmax.f32 %v566_v45, 0.0  ;;  %v632_v21 = vmax.f32 %v4680_v29, 0.0  ;;  %v3898_v29 = vld [vmem:[#allocation5 + $0x2c] ss:$16 sps:$4 sm:$0xff]  }
 0x100   :  { %v484_v47 = vadd.f32 %v420_v24, %v256_v10  ;;  %v485_v53 = vadd.f32 %v421_v57, %v257_v19  ;;  %v486_v26 = vadd.f32 %v422_v48, %v258_v1  ;;  %v487_v11 = vadd.f32 %v423_v51, %v259_v8  ;;  %1636 = vmatmul.mubr.bf16.gmra.mrb[24].mxu1 %v662_v4  ;;  %v3902_v1 = vld [vmem:[#allocation5 + $0x48] ss:$16 sps:$4 sm:$0xff]   ;;  %v3913_v34 = vld [vmem:[#allocation5 + $0x84] ss:$16 sps:$4 sm:$0xff]   ;;  %v3916_v5 = vld [vmem:[#allocation5 + $0x8c] ss:$16 sps:$4 sm:$0xff]  }
 0x101   :  { %v3911_v0 = vld [vmem:[#allocation5 + $0x80] ss:$16 sps:$4 sm:$0xff]   ;;  %v3914_v52 = vld [vmem:[#allocation5 + $0x88] ss:$16 sps:$4 sm:$0xff]   ;;  %v3922_v10 = vld [vmem:[#allocation5 + $0xac] ss:$16 sps:$4 sm:$0xff]  }
 0x102   :  { %v573_v39 = vadd.f32 %v4351_v50, %v487_v11  ;;  %v571_v40 = vadd.f32 %v4362_v60, %v485_v53  ;;  %v570_v41 = vadd.f32 %v4365_v61, %v484_v47  ;;  %v572_v42 = vadd.f32 %v4348_v49, %v486_v26  ;;  %v5076_v49 = vld [vmem:[#allocation15_spill] sm:$0xff]  ;;  %v3887_v60 = vld [vmem:[#allocation5] ss:$16 sps:$4 sm:$0xff]   ;;  %v3925_v4 = vld [vmem:[#allocation5 + $0xc4] ss:$16 sps:$4 sm:$0xff]  }
 0x103   :  { %v3890_v61 = vld [vmem:[#allocation5 + $0x8] ss:$16 sps:$4 sm:$0xff]   ;;  %v3928_v19 = vld [vmem:[#allocation5 + $0xcc] ss:$16 sps:$4 sm:$0xff]   ;;  %v3923_v8 = vld [vmem:[#allocation5 + $0xc0] ss:$16 sps:$4 sm:$0xff]  }
 0x104   :  { %v635_v37 = vmax.f32 %v571_v40, 0.0  ;;  %v634_v59 = vmax.f32 %v570_v41, 0.0  ;;  %v637_v7 = vmax.f32 %v573_v39, 0.0  ;;  %v636_v17 = vmax.f32 %v572_v42, 0.0  ;;  %v3920_v23 = vld [vmem:[#allocation5 + $0xa8] ss:$16 sps:$4 sm:$0xff]  }
 0x105   :  { %v3926_v38 = vld [vmem:[#allocation5 + $0xc8] ss:$16 sps:$4 sm:$0xff]   ;;  %v3934_v24 = vld [vmem:[#allocation5 + $0xec] ss:$16 sps:$4 sm:$0xff]   ;;  %v3937_v48 = vld [vmem:[#allocation5 + $0x104] ss:$16 sps:$4 sm:$0xff]  }
 0x106   :  { %v667_v15 = vpack.c.bf16 %v635_v37, %v631_v12  ;;  %v666_v27 = vpack.c.bf16 %v634_v59, %v630_v25  ;;  %v4725_v6 = vpack.c.bf16 %v637_v7, %v633_v14  ;;  %v4727_v50 = vpack.c.bf16 %v636_v17, %v632_v21  ;;  %v3932_v57 = vld [vmem:[#allocation5 + $0xe8] ss:$16 sps:$4 sm:$0xff]   ;;  %v3940_v51 = vld [vmem:[#allocation5 + $0x10c] ss:$16 sps:$4 sm:$0xff]   ;;  %v3935_v44 = vld [vmem:[#allocation5 + $0x100] ss:$16 sps:$4 sm:$0xff]  }
 0x107   :  { %v3938_v45 = vld [vmem:[#allocation5 + $0x108] ss:$16 sps:$4 sm:$0xff]   ;;  %v3946_v47 = vld [vmem:[#allocation5 + $0x12c] ss:$16 sps:$4 sm:$0xff]   ;;  %v3949_v26 = vld [vmem:[#allocation5 + $0x144] ss:$16 sps:$4 sm:$0xff]  }
 0x108   :  { %1419 = vmatprep.mubr.bf16.mxu0 %v667_v15  ;;  %1645 = vmatprep.mubr.bf16.mxu1 %v667_v15  ;;  %v3944_v53 = vld [vmem:[#allocation5 + $0x128] ss:$16 sps:$4 sm:$0xff]   ;;  %v3952_v11 = vld [vmem:[#allocation5 + $0x14c] ss:$16 sps:$4 sm:$0xff]   ;;  %v3947_v39 = vld [vmem:[#allocation5 + $0x140] ss:$16 sps:$4 sm:$0xff]  }
 0x109   :  { %1420 = vmatmul.mubr.bf16.gmra.mrb[28].mxu0 %v666_v27  ;;  %1646 = vmatmul.mubr.bf16.gmra.mrb[28].mxu1 %v666_v27  ;;  %v3950_v40 = vld [vmem:[#allocation5 + $0x148] ss:$16 sps:$4 sm:$0xff]   ;;  %v3958_v41 = vld [vmem:[#allocation5 + $0x16c] ss:$16 sps:$4 sm:$0xff]   ;;  %v3961_v14 = vld [vmem:[#allocation5 + $0x184] ss:$16 sps:$4 sm:$0xff]  }
 0x10a   :  { %3304 = vmatprep.mubr.msk.bf16.mxu0 %vm1292_vm0, %v5076_v49  ;;  %3312 = vmatprep.mubr.msk.bf16.mxu1 %vm1292_vm0, %v5076_v49  ;;  %v3956_v42 = vld [vmem:[#allocation5 + $0x168] ss:$16 sps:$4 sm:$0xff]   ;;  %v3964_v12 = vld [vmem:[#allocation5 + $0x18c] ss:$16 sps:$4 sm:$0xff]   ;;  %v3959_v25 = vld [vmem:[#allocation5 + $0x180] ss:$16 sps:$4 sm:$0xff]  }
 0x10b   :  { %v3962_v21 = vld [vmem:[#allocation5 + $0x188] ss:$16 sps:$4 sm:$0xff]   ;;  %v3970_v37 = vld [vmem:[#allocation5 + $0x1ac] ss:$16 sps:$4 sm:$0xff]   ;;  %v3971_v7 = vld [vmem:[#allocation5 + $0x1c0] ss:$16 sps:$4 sm:$0xff]  }
 0x10c   :  { %v3968_v59 = vld [vmem:[#allocation5 + $0x1a8] ss:$16 sps:$4 sm:$0xff]   ;;  %v3976_v15 = vld [vmem:[#allocation5 + $0x1cc] ss:$16 sps:$4 sm:$0xff]   ;;  %v3979_v27 = vld [vmem:[#allocation5 + $0x1e4] ss:$16 sps:$4 sm:$0xff]  }
 0x10d   :  { %v3974_v17 = vld [vmem:[#allocation5 + $0x1c8] ss:$16 sps:$4 sm:$0xff]   ;;  %v3982_v49 = vld [vmem:[#allocation5 + $0x1ec] ss:$16 sps:$4 sm:$0xff]  }
 0x111   :  { %1463 = vmatmul.mubr.bf16.vlgmr.msra.gmra.mrb[0].mxu0 %v5077_v35  ;;  %1689 = vmatmul.mubr.bf16.vlgmr.msra.gmra.mrb[0].mxu1 %v5077_v35 }
 0x112   :  { %3305 = vmatprep.mubr.msk.bf16.mxu0 %vm1292_vm0, %v5078_v36  ;;  %3313 = vmatprep.mubr.msk.bf16.mxu1 %vm1292_vm0, %v5078_v36  ;;  %v5080_v36 = vld [vmem:[#allocation14_spill] sm:$0xff] }
 0x113   :  { %2512 = vmatpush1.bf16.msra.mxu0 %v3887_v60  ;;  %2738 = vmatpush1.bf16.msra.mxu1 %v3890_v61  ;;  %v3980_v60 = vld [vmem:[#allocation5 + $0x1e8] ss:$16 sps:$4 sm:$0xff]   ;;  %v3985_v61 = vld [vmem:[#allocation5 + $0x204] ss:$16 sps:$4 sm:$0xff]  }
 0x114   :  { %2513 = vmatprep.subr.bf16.mxu0 %v3895_v22  ;;  %2739 = vmatprep.subr.bf16.mxu1 %v3898_v29  ;;  %v3988_v22 = vld [vmem:[#allocation5 + $0x20c] ss:$16 sps:$4 sm:$0xff]  }
 0x115   :  { %v5079_v29 = vld [vmem:[#allocation13_spill] sm:$0xff] }
 0x117   :  { %2514 = vmatpush1.bf16.msra.mxu0 %v3893_v28  ;;  %2740 = vmatpush1.bf16.msra.mxu1 %v3896_v13  ;;  %v5081_v13 = vld [vmem:[#allocation11_spill] sm:$0xff] }
 0x118   :  { %2515 = vmatprep.subr.bf16.mxu0 %v3901_v62  ;;  %2741 = vmatprep.subr.bf16.mxu1 %v3904_v3  ;;  %v5082_v3 = vld [vmem:[#allocation12_spill] sm:$0xff] }
 0x119   :  { %1473 = vmatmul.mubr.bf16.gmra.mrb[4].mxu0 %v4624_v55  ;;  %1699 = vmatmul.mubr.bf16.gmra.mrb[4].mxu1 %v4624_v55  ;;  %v3919_v55 = vld [vmem:[#allocation5 + $0xa4] ss:$16 sps:$4 sm:$0xff]  }
 0x11a   :  { %3306 = vmatprep.mubr.msk.bf16.mxu0 %vm1292_vm0, %v4618_v30  ;;  %3314 = vmatprep.mubr.msk.bf16.mxu1 %vm1292_vm0, %v4618_v30  ;;  %v3917_v30 = vld [vmem:[#allocation5 + $0xa0] ss:$16 sps:$4 sm:$0xff]  }
 0x11b   :  { %2516 = vmatpush1.bf16.msra.mxu0 %v3899_v58  ;;  %2742 = vmatpush1.bf16.msra.mxu1 %v3902_v1 }
 0x11c   :  { %2517 = vmatprep.subr.bf16.mxu0 %v3907_v9  ;;  %2743 = vmatprep.subr.bf16.mxu1 %v3910_v16 }
 0x11f   :  { %2518 = vmatpush1.bf16.msra.mxu0 %v3905_v43  ;;  %2744 = vmatpush1.bf16.msra.mxu1 %v3908_v2 }
 0x120   :  { %2519 = vmatprep.subr.bf16.mxu0 %v3913_v34  ;;  %2745 = vmatprep.subr.bf16.mxu1 %v3916_v5 }
 0x121   :  { %1483 = vmatmul.mubr.bf16.gmra.mrb[8].mxu0 %v4652_v56  ;;  %1709 = vmatmul.mubr.bf16.gmra.mrb[8].mxu1 %v4652_v56  ;;  %v3931_v56 = vld [vmem:[#allocation5 + $0xe4] ss:$16 sps:$4 sm:$0xff]  }
 0x122   :  { %3307 = vmatprep.mubr.msk.bf16.mxu0 %vm1292_vm0, %v4654_v20  ;;  %3315 = vmatprep.mubr.msk.bf16.mxu1 %vm1292_vm0, %v4654_v20  ;;  %v3929_v20 = vld [vmem:[#allocation5 + $0xe0] ss:$16 sps:$4 sm:$0xff]  }
 0x123   :  { %2520 = vmatpush1.bf16.msra.mxu0 %v3911_v0  ;;  %2746 = vmatpush1.bf16.msra.mxu1 %v3914_v52 }
 0x124   :  { %2521 = vmatprep.subr.bf16.mxu0 %v3919_v55  ;;  %2747 = vmatprep.subr.bf16.mxu1 %v3922_v10 }
 0x127   :  { %2522 = vmatpush1.bf16.msra.mxu0 %v3917_v30  ;;  %2748 = vmatpush1.bf16.msra.mxu1 %v3920_v23 }
 0x128   :  { %2523 = vmatprep.subr.bf16.mxu0 %v3925_v4  ;;  %2749 = vmatprep.subr.bf16.mxu1 %v3928_v19 }
 0x129   :  { %1493 = vmatmul.mubr.bf16.gmra.mrb[12].mxu0 %v4662_v63  ;;  %1719 = vmatmul.mubr.bf16.gmra.mrb[12].mxu1 %v4662_v63  ;;  %v3943_v63 = vld [vmem:[#allocation5 + $0x124] ss:$16 sps:$4 sm:$0xff]  }
 0x12a   :  { %3308 = vmatprep.mubr.msk.bf16.mxu0 %vm1292_vm0, %v4664_v33  ;;  %3316 = vmatprep.mubr.msk.bf16.mxu1 %vm1292_vm0, %v4664_v33  ;;  %v3941_v33 = vld [vmem:[#allocation5 + $0x120] ss:$16 sps:$4 sm:$0xff]  }
 0x12b   :  { %2524 = vmatpush1.bf16.msra.mxu0 %v3923_v8  ;;  %2750 = vmatpush1.bf16.msra.mxu1 %v3926_v38 }
 0x12c   :  { %2525 = vmatprep.subr.bf16.mxu0 %v3931_v56  ;;  %2751 = vmatprep.subr.bf16.mxu1 %v3934_v24 }
 0x12f   :  { %2526 = vmatpush1.bf16.msra.mxu0 %v3929_v20  ;;  %2752 = vmatpush1.bf16.msra.mxu1 %v3932_v57 }
 0x130   :  { %2527 = vmatprep.subr.bf16.mxu0 %v3937_v48  ;;  %2753 = vmatprep.subr.bf16.mxu1 %v3940_v51 }
 0x131   :  { %1503 = vmatmul.mubr.bf16.gmra.mrb[16].mxu0 %v4675_v18  ;;  %1729 = vmatmul.mubr.bf16.gmra.mrb[16].mxu1 %v4675_v18  ;;  %v3955_v18 = vld [vmem:[#allocation5 + $0x164] ss:$16 sps:$4 sm:$0xff]  }
 0x132   :  { %3309 = vmatprep.mubr.msk.bf16.mxu0 %vm1292_vm0, %v4671_v31  ;;  %3317 = vmatprep.mubr.msk.bf16.mxu1 %vm1292_vm0, %v4671_v31  ;;  %v3953_v31 = vld [vmem:[#allocation5 + $0x160] ss:$16 sps:$4 sm:$0xff]  }
 0x133   :  { %2528 = vmatpush1.bf16.msra.mxu0 %v3935_v44  ;;  %2754 = vmatpush1.bf16.msra.mxu1 %v3938_v45 }
 0x134   :  { %2529 = vmatprep.subr.bf16.mxu0 %v3943_v63  ;;  %2755 = vmatprep.subr.bf16.mxu1 %v3946_v47 }
 0x137   :  { %2530 = vmatpush1.bf16.msra.mxu0 %v3941_v33  ;;  %2756 = vmatpush1.bf16.msra.mxu1 %v3944_v53 }
 0x138   :  { %2531 = vmatprep.subr.bf16.mxu0 %v3949_v26  ;;  %2757 = vmatprep.subr.bf16.mxu1 %v3952_v11  ;;  %v3983_v11 = vld [vmem:[#allocation5 + $0x200] ss:$16 sps:$4 sm:$0xff]  }
 0x139   :  { %1513 = vmatmul.mubr.bf16.gmra.mrb[20].mxu0 %v4695_v54  ;;  %1739 = vmatmul.mubr.bf16.gmra.mrb[20].mxu1 %v4695_v54  ;;  %v3967_v54 = vld [vmem:[#allocation5 + $0x1a4] ss:$16 sps:$4 sm:$0xff]  }
 0x13a   :  { %3310 = vmatprep.mubr.msk.bf16.mxu0 %vm1292_vm0, %v4709_v32  ;;  %3318 = vmatprep.mubr.msk.bf16.mxu1 %vm1292_vm0, %v4709_v32  ;;  %v3965_v32 = vld [vmem:[#allocation5 + $0x1a0] ss:$16 sps:$4 sm:$0xff]  }
 0x13b   :  { %2532 = vmatpush1.bf16.msra.mxu0 %v3947_v39  ;;  %2758 = vmatpush1.bf16.msra.mxu1 %v3950_v40  ;;  %v3986_v39 = vld [vmem:[#allocation5 + $0x208] ss:$16 sps:$4 sm:$0xff]  }
 0x13c   :  { %2533 = vmatprep.subr.bf16.mxu0 %v3955_v18  ;;  %2759 = vmatprep.subr.bf16.mxu1 %v3958_v41 }
 0x13f   :  { %2534 = vmatpush1.bf16.msra.mxu0 %v3953_v31  ;;  %2760 = vmatpush1.bf16.msra.mxu1 %v3956_v42  ;;  %v3991_v42 = vld [vmem:[#allocation5 + $0x224] ss:$16 sps:$4 sm:$0xff]  }
 0x140   :  { %2535 = vmatprep.subr.bf16.mxu0 %v3961_v14  ;;  %2761 = vmatprep.subr.bf16.mxu1 %v3964_v12  ;;  %v3994_v14 = vld [vmem:[#allocation5 + $0x22c] ss:$16 sps:$4 sm:$0xff]  }
 0x141   :  { %1523 = vmatmul.mubr.bf16.gmra.mrb[24].mxu0 %v4711_v46  ;;  %1749 = vmatmul.mubr.bf16.gmra.mrb[24].mxu1 %v4711_v46  ;;  %v3973_v46 = vld [vmem:[#allocation5 + $0x1c4] ss:$16 sps:$4 sm:$0xff]  }
 0x142   :  { %3311 = vmatprep.mubr.msk.bf16.mxu0 %vm1292_vm0, %v4725_v6  ;;  %3319 = vmatprep.mubr.msk.bf16.mxu1 %vm1292_vm0, %v4725_v6  ;;  %v3977_v6 = vld [vmem:[#allocation5 + $0x1e0] ss:$16 sps:$4 sm:$0xff]  }
 0x143   :  { %2536 = vmatpush1.bf16.msra.mxu0 %v3959_v25  ;;  %2762 = vmatpush1.bf16.msra.mxu1 %v3962_v21 }
 0x144   :  { %2537 = vmatprep.subr.bf16.mxu0 %v3967_v54  ;;  %2763 = vmatprep.subr.bf16.mxu1 %v3970_v37 }
 0x147   :  { %2538 = vmatpush1.bf16.msra.mxu0 %v3965_v32  ;;  %2764 = vmatpush1.bf16.msra.mxu1 %v3968_v59 }
 0x148   :  { %2539 = vmatprep.subr.bf16.mxu0 %v3973_v46  ;;  %2765 = vmatprep.subr.bf16.mxu1 %v3976_v15  ;;  %v3989_v15 = vld [vmem:[#allocation5 + $0x220] ss:$16 sps:$4 sm:$0xff]  }
 0x149   :  { %1533 = vmatmul.mubr.bf16.gmra.mrb[28].mxu0 %v4727_v50  ;;  %1759 = vmatmul.mubr.bf16.gmra.mrb[28].mxu1 %v4727_v50  ;;  %v770_v50 = vld [vmem:[%s5049_s4] sm:$0xf] }
 0x14a   :  { %v4781_v35 = vrot.slane %v770_v50, %v5079_v29  ;;  %v4784_v28 = vrot.slane %v770_v50, %v5080_v36  ;;  %v4787_v62 = vrot.slane %v770_v50, %v5081_v13  ;;  %v4790_v58 = vrot.slane %v770_v50, %v5082_v3  ;;  %v4000_v50 = vld [vmem:[#allocation5 + $0x24c] ss:$16 sps:$4 sm:$0xff]  }
 0x14b   :  { %2540 = vmatpush1.bf16.msra.mxu0 %v3971_v7  ;;  %2766 = vmatpush1.bf16.msra.mxu1 %v3974_v17 }
 0x14c   :  { %2541 = vmatprep.subr.bf16.mxu0 %v3979_v27  ;;  %2767 = vmatprep.subr.bf16.mxu1 %v3982_v49  ;;  %v3992_v27 = vld [vmem:[#allocation5 + $0x228] ss:$16 sps:$4 sm:$0xff]   ;;  %v3997_v49 = vld [vmem:[#allocation5 + $0x244] ss:$16 sps:$4 sm:$0xff]  }
 0x14f   :  { %2542 = vmatpush1.bf16.msra.mxu0 %v3977_v6  ;;  %2768 = vmatpush1.bf16.msra.mxu1 %v3980_v60 }
 0x150   :  { %2624 = vmatprep.subr.bf16.mxu0 %v3985_v61  ;;  %2850 = vmatprep.subr.bf16.mxu1 %v3988_v22 }
 0x1e4   :  { %v1464_v1 = vpop.f32.mrb[0].mxu0  ;;  %v1690_v9 = vpop.f32.mrb[0].mxu1 }
 0x1e5   :  { %v3449_v16 = vadd.f32 %v1464_v1, %v4781_v35  ;;  %v3481_v43 = vadd.f32 %v1690_v9, %v4784_v28  ;;  %v1466_v2 = vpop.f32.mrb[1].mxu0  ;;  %v1692_v34 = vpop.f32.mrb[1].mxu1 }
 0x1e6   :  { %v3450_v5 = vadd.f32 %v1466_v2, %v4787_v62  ;;  %v3482_v0 = vadd.f32 %v1692_v34, %v4790_v58  ;;  %v1468_v52 = vpop.f32.mrb[2].mxu0  ;;  %v1694_v55 = vpop.f32.mrb[2].mxu1 }
 0x1e7   :  { %v3451_v10 = vadd.f32 %v1468_v52, %v4781_v35  ;;  %v3483_v30 = vadd.f32 %v1694_v55, %v4784_v28  ;;  %v1470_v23 = vpop.f32.mrb[3].mxu0  ;;  %v1696_v4 = vpop.f32.mrb[3].mxu1  ;;  %v1769_v38 = vmax.f32 %v3449_v16, 0.0  ;;  %v1771_v56 = vmax.f32 %v3481_v43, 0.0 }
 0x1e8   :  { %v3452_v19 = vadd.f32 %v1470_v23, %v4787_v62  ;;  %v3484_v8 = vadd.f32 %v1696_v4, %v4790_v58  ;;  %v1770_v57 = vmax.f32 %v3450_v5, 0.0  ;;  %v1772_v48 = vmax.f32 %v3482_v0, 0.0 }
 0x1e9   :  { %v1773_v24 = vmax.f32 %v3451_v10, 0.0  ;;  %v1775_v20 = vmax.f32 %v3483_v30, 0.0  ;;  %v3995_v10 = vld [vmem:[#allocation5 + $0x240] ss:$16 sps:$4 sm:$0xff]   ;;  %v3998_v30 = vld [vmem:[#allocation5 + $0x248] ss:$16 sps:$4 sm:$0xff]  }
 0x1ea   :  { %v1774_v51 = vmax.f32 %v3452_v19, 0.0  ;;  %v1776_v44 = vmax.f32 %v3484_v8, 0.0 }
 0x1eb   :  { %v1833_v45 = vpack.c.bf16 %v1773_v24, %v1769_v38  ;;  %v4800_v63 = vpack.c.bf16 %v1775_v20, %v1771_v56  ;;  %v4003_v38 = vld [vmem:[#allocation5 + $0x264] ss:$16 sps:$4 sm:$0xff]   ;;  %v4006_v56 = vld [vmem:[#allocation5 + $0x26c] ss:$16 sps:$4 sm:$0xff]  }
 0x1ec   :  { %v1834_v47 = vpack.c.bf16 %v1774_v51, %v1770_v57  ;;  %v4802_v33 = vpack.c.bf16 %v1776_v44, %v1772_v48  ;;  %v1474_v53 = vpop.f32.mrb[4].mxu0  ;;  %v1700_v26 = vpop.f32.mrb[4].mxu1 }
 0x1ed   :  { %v3453_v40 = vadd.f32 %v1474_v53, %v4781_v35  ;;  %v3485_v18 = vadd.f32 %v1700_v26, %v4784_v28  ;;  %v1476_v41 = vpop.f32.mrb[5].mxu0  ;;  %v1702_v31 = vpop.f32.mrb[5].mxu1 }
 0x1ee   :  { %v3454_v12 = vadd.f32 %v1476_v41, %v4787_v62  ;;  %v3486_v25 = vadd.f32 %v1702_v31, %v4790_v58  ;;  %v1478_v21 = vpop.f32.mrb[6].mxu0  ;;  %v1704_v54 = vpop.f32.mrb[6].mxu1  ;;  %2543 = vmatprep.mubr.bf16.mxu0 %v1834_v47  ;;  %2769 = vmatprep.mubr.bf16.mxu1 %v1834_v47 }
 0x1ef   :  { %v3455_v37 = vadd.f32 %v1478_v21, %v4781_v35  ;;  %v3487_v32 = vadd.f32 %v1704_v54, %v4784_v28  ;;  %v1480_v59 = vpop.f32.mrb[7].mxu0  ;;  %v1706_v7 = vpop.f32.mrb[7].mxu1  ;;  %2544 = vmatmul.mubr.bf16.vlgmr.msra.gmra.mrb[32].mxu0 %v1833_v45  ;;  %2770 = vmatmul.mubr.bf16.vlgmr.msra.gmra.mrb[32].mxu1 %v1833_v45  ;;  %v1777_v6 = vmax.f32 %v3453_v40, 0.0  ;;  %v1779_v60 = vmax.f32 %v3485_v18, 0.0  ;;  %v4009_v40 = vld [vmem:[#allocation5 + $0x284] ss:$16 sps:$4 sm:$0xff]  }
 0x1f0   :  { %v3456_v46 = vadd.f32 %v1480_v59, %v4787_v62  ;;  %v3488_v17 = vadd.f32 %v1706_v7, %v4790_v58  ;;  %2625 = vmatpush1.bf16.msra.mxu0 %v3983_v11  ;;  %2851 = vmatpush1.bf16.msra.mxu1 %v3986_v39  ;;  %v1778_v1 = vmax.f32 %v3454_v12, 0.0  ;;  %v1780_v9 = vmax.f32 %v3486_v25, 0.0  ;;  %v4001_v11 = vld [vmem:[#allocation5 + $0x260] ss:$16 sps:$4 sm:$0xff]   ;;  %v4004_v39 = vld [vmem:[#allocation5 + $0x268] ss:$16 sps:$4 sm:$0xff]  }
 0x1f1   :  { %v1781_v61 = vmax.f32 %v3455_v37, 0.0  ;;  %v1783_v22 = vmax.f32 %v3487_v32, 0.0  ;;  %2626 = vmatprep.subr.bf16.mxu0 %v3991_v42  ;;  %2852 = vmatprep.subr.bf16.mxu1 %v3994_v14  ;;  %v4012_v14 = vld [vmem:[#allocation5 + $0x28c] ss:$16 sps:$4 sm:$0xff]  }
 0x1f2   :  { %v1782_v16 = vmax.f32 %v3456_v46, 0.0  ;;  %v1784_v43 = vmax.f32 %v3488_v17, 0.0 }
 0x1f3   :  { %v1837_v2 = vpack.c.bf16 %v1781_v61, %v1777_v6  ;;  %v4812_v34 = vpack.c.bf16 %v1783_v22, %v1779_v60  ;;  %v4015_v22 = vld [vmem:[#allocation5 + $0x2a4] ss:$16 sps:$4 sm:$0xff]  }
 0x1f4   :  { %v1838_v5 = vpack.c.bf16 %v1782_v16, %v1778_v1  ;;  %v4814_v0 = vpack.c.bf16 %v1784_v43, %v1780_v9  ;;  %v1484_v52 = vpop.f32.mrb[8].mxu0  ;;  %v1710_v55 = vpop.f32.mrb[8].mxu1  ;;  %2627 = vmatpush1.bf16.msra.mxu0 %v3989_v15  ;;  %2853 = vmatpush1.bf16.msra.mxu1 %v3992_v27  ;;  %v4007_v15 = vld [vmem:[#allocation5 + $0x280] ss:$16 sps:$4 sm:$0xff]   ;;  %v4010_v27 = vld [vmem:[#allocation5 + $0x288] ss:$16 sps:$4 sm:$0xff]  }
 0x1f5   :  { %v3457_v23 = vadd.f32 %v1484_v52, %v4781_v35  ;;  %v3489_v4 = vadd.f32 %v1710_v55, %v4784_v28  ;;  %v1486_v19 = vpop.f32.mrb[9].mxu0  ;;  %v1712_v8 = vpop.f32.mrb[9].mxu1  ;;  %2628 = vmatprep.subr.bf16.mxu0 %v3997_v49  ;;  %2854 = vmatprep.subr.bf16.mxu1 %v4000_v50  ;;  %v4018_v50 = vld [vmem:[#allocation5 + $0x2ac] ss:$16 sps:$4 sm:$0xff]  }
 0x1f6   :  { %v3458_v24 = vadd.f32 %v1486_v19, %v4787_v62  ;;  %v3490_v20 = vadd.f32 %v1712_v8, %v4790_v58  ;;  %v1488_v57 = vpop.f32.mrb[10].mxu0  ;;  %v1714_v48 = vpop.f32.mrb[10].mxu1  ;;  %2553 = vmatprep.mubr.bf16.mxu0 %v1838_v5  ;;  %2779 = vmatprep.mubr.bf16.mxu1 %v1838_v5  ;;  %v4021_v19 = vld [vmem:[#allocation5 + $0x2c4] ss:$16 sps:$4 sm:$0xff]  }
 0x1f7   :  { %v3459_v51 = vadd.f32 %v1488_v57, %v4781_v35  ;;  %v3491_v44 = vadd.f32 %v1714_v48, %v4784_v28  ;;  %v1490_v45 = vpop.f32.mrb[11].mxu0  ;;  %v1716_v47 = vpop.f32.mrb[11].mxu1  ;;  %2554 = vmatmul.mubr.bf16.gmra.mrb[36].mxu0 %v1837_v2  ;;  %2780 = vmatmul.mubr.bf16.gmra.mrb[36].mxu1 %v1837_v2  ;;  %v1785_v18 = vmax.f32 %v3457_v23, 0.0  ;;  %v1787_v41 = vmax.f32 %v3489_v4, 0.0  ;;  %v4013_v23 = vld [vmem:[#allocation5 + $0x2a0] ss:$16 sps:$4 sm:$0xff]  }
 0x1f8   :  { %v3460_v53 = vadd.f32 %v1490_v45, %v4787_v62  ;;  %v3492_v26 = vadd.f32 %v1716_v47, %v4790_v58  ;;  %2629 = vmatpush1.bf16.msra.mxu0 %v3995_v10  ;;  %2855 = vmatpush1.bf16.msra.mxu1 %v3998_v30  ;;  %v1786_v12 = vmax.f32 %v3458_v24, 0.0  ;;  %v1788_v25 = vmax.f32 %v3490_v20, 0.0  ;;  %v4016_v4 = vld [vmem:[#allocation5 + $0x2a8] ss:$16 sps:$4 sm:$0xff]   ;;  %v4024_v20 = vld [vmem:[#allocation5 + $0x2cc] ss:$16 sps:$4 sm:$0xff]  }
 0x1f9   :  { %v1789_v31 = vmax.f32 %v3459_v51, 0.0  ;;  %v1791_v42 = vmax.f32 %v3491_v44, 0.0  ;;  %2630 = vmatprep.subr.bf16.mxu0 %v4003_v38  ;;  %2856 = vmatprep.subr.bf16.mxu1 %v4006_v56 }
 0x1fa   :  { %v1790_v21 = vmax.f32 %v3460_v53, 0.0  ;;  %v1792_v54 = vmax.f32 %v3492_v26, 0.0 }
 0x1fb   :  { %v1841_v37 = vpack.c.bf16 %v1789_v31, %v1785_v18  ;;  %v4824_v32 = vpack.c.bf16 %v1791_v42, %v1787_v41  ;;  %v4022_v18 = vld [vmem:[#allocation5 + $0x2c8] ss:$16 sps:$4 sm:$0xff]  }
 0x1fc   :  { %v1842_v59 = vpack.c.bf16 %v1790_v21, %v1786_v12  ;;  %v4826_v7 = vpack.c.bf16 %v1792_v54, %v1788_v25  ;;  %v1494_v46 = vpop.f32.mrb[12].mxu0  ;;  %v1720_v17 = vpop.f32.mrb[12].mxu1  ;;  %2631 = vmatpush1.bf16.msra.mxu0 %v4001_v11  ;;  %2857 = vmatpush1.bf16.msra.mxu1 %v4004_v39  ;;  %v4027_v12 = vld [vmem:[#allocation5 + $0x2e4] ss:$16 sps:$4 sm:$0xff]   ;;  %v4030_v25 = vld [vmem:[#allocation5 + $0x2ec] ss:$16 sps:$4 sm:$0xff]  }
 0x1fd   :  { %v3461_v49 = vadd.f32 %v1494_v46, %v4781_v35  ;;  %v3493_v6 = vadd.f32 %v1720_v17, %v4784_v28  ;;  %v1496_v60 = vpop.f32.mrb[13].mxu0  ;;  %v1722_v61 = vpop.f32.mrb[13].mxu1  ;;  %2632 = vmatprep.subr.bf16.mxu0 %v4009_v40  ;;  %2858 = vmatprep.subr.bf16.mxu1 %v4012_v14  ;;  %v4019_v40 = vld [vmem:[#allocation5 + $0x2c0] ss:$16 sps:$4 sm:$0xff]  }
 0x1fe   :  { %v3462_v1 = vadd.f32 %v1496_v60, %v4787_v62  ;;  %v3494_v9 = vadd.f32 %v1722_v61, %v4790_v58  ;;  %v1498_v16 = vpop.f32.mrb[14].mxu0  ;;  %v1724_v43 = vpop.f32.mrb[14].mxu1  ;;  %2563 = vmatprep.mubr.bf16.mxu0 %v1842_v59  ;;  %2789 = vmatprep.mubr.bf16.mxu1 %v1842_v59  ;;  %v4025_v60 = vld [vmem:[#allocation5 + $0x2e0] ss:$16 sps:$4 sm:$0xff]   ;;  %v4028_v61 = vld [vmem:[#allocation5 + $0x2e8] ss:$16 sps:$4 sm:$0xff]  }
 0x1ff   :  { %v3463_v2 = vadd.f32 %v1498_v16, %v4781_v35  ;;  %v3495_v5 = vadd.f32 %v1724_v43, %v4784_v28  ;;  %v1500_v52 = vpop.f32.mrb[15].mxu0  ;;  %v1726_v55 = vpop.f32.mrb[15].mxu1  ;;  %2564 = vmatmul.mubr.bf16.gmra.mrb[40].mxu0 %v1841_v37  ;;  %2790 = vmatmul.mubr.bf16.gmra.mrb[40].mxu1 %v1841_v37  ;;  %v1793_v8 = vmax.f32 %v3461_v49, 0.0  ;;  %v1795_v38 = vmax.f32 %v3493_v6, 0.0  ;;  %v4036_v43 = vld [vmem:[#allocation5 + $0x30c] ss:$16 sps:$4 sm:$0xff]  }
 0x200   :  { %v3464_v10 = vadd.f32 %v1500_v52, %v4787_v62  ;;  %v3496_v30 = vadd.f32 %v1726_v55, %v4790_v58  ;;  %2633 = vmatpush1.bf16.msra.mxu0 %v4007_v15  ;;  %2859 = vmatpush1.bf16.msra.mxu1 %v4010_v27  ;;  %v1794_v57 = vmax.f32 %v3462_v1, 0.0  ;;  %v1796_v48 = vmax.f32 %v3494_v9, 0.0 }
 0x201   :  { %v1797_v56 = vmax.f32 %v3463_v2, 0.0  ;;  %v1799_v24 = vmax.f32 %v3495_v5, 0.0  ;;  %2634 = vmatprep.subr.bf16.mxu0 %v4015_v22  ;;  %2860 = vmatprep.subr.bf16.mxu1 %v4018_v50  ;;  %v4033_v22 = vld [vmem:[#allocation5 + $0x304] ss:$16 sps:$4 sm:$0xff]  }
 0x202   :  { %v1798_v51 = vmax.f32 %v3464_v10, 0.0  ;;  %v1800_v44 = vmax.f32 %v3496_v30, 0.0 }
 0x203   :  { %v1845_v45 = vpack.c.bf16 %v1797_v56, %v1793_v8  ;;  %v4836_v47 = vpack.c.bf16 %v1799_v24, %v1795_v38  ;;  %v4031_v38 = vld [vmem:[#allocation5 + $0x300] ss:$16 sps:$4 sm:$0xff]   ;;  %v4034_v56 = vld [vmem:[#allocation5 + $0x308] ss:$16 sps:$4 sm:$0xff]  }
 0x204   :  { %v1846_v53 = vpack.c.bf16 %v1798_v51, %v1794_v57  ;;  %v4838_v26 = vpack.c.bf16 %v1800_v44, %v1796_v48  ;;  %v1504_v11 = vpop.f32.mrb[16].mxu0  ;;  %v1730_v39 = vpop.f32.mrb[16].mxu1  ;;  %2635 = vmatpush1.bf16.msra.mxu0 %v4013_v23  ;;  %2861 = vmatpush1.bf16.msra.mxu1 %v4016_v4 }
 0x205   :  { %v3465_v41 = vadd.f32 %v1504_v11, %v4781_v35  ;;  %v3497_v31 = vadd.f32 %v1730_v39, %v4784_v28  ;;  %v1506_v42 = vpop.f32.mrb[17].mxu0  ;;  %v1732_v14 = vpop.f32.mrb[17].mxu1  ;;  %2636 = vmatprep.subr.bf16.mxu0 %v4021_v19  ;;  %2862 = vmatprep.subr.bf16.mxu1 %v4024_v20 }
 0x206   :  { %v3466_v21 = vadd.f32 %v1506_v42, %v4787_v62  ;;  %v3498_v54 = vadd.f32 %v1732_v14, %v4790_v58  ;;  %v1508_v37 = vpop.f32.mrb[18].mxu0  ;;  %v1734_v59 = vpop.f32.mrb[18].mxu1  ;;  %2573 = vmatprep.mubr.bf16.mxu0 %v1846_v53  ;;  %2799 = vmatprep.mubr.bf16.mxu1 %v1846_v53 }
 0x207   :  { %v3467_v46 = vadd.f32 %v1508_v37, %v4781_v35  ;;  %v3499_v17 = vadd.f32 %v1734_v59, %v4784_v28  ;;  %v1510_v15 = vpop.f32.mrb[19].mxu0  ;;  %v1736_v27 = vpop.f32.mrb[19].mxu1  ;;  %2574 = vmatmul.mubr.bf16.gmra.mrb[44].mxu0 %v1845_v45  ;;  %2800 = vmatmul.mubr.bf16.gmra.mrb[44].mxu1 %v1845_v45  ;;  %v1801_v50 = vmax.f32 %v3465_v41, 0.0  ;;  %v1803_v1 = vmax.f32 %v3497_v31, 0.0 }
 0x208   :  { %v3468_v49 = vadd.f32 %v1510_v15, %v4787_v62  ;;  %v3500_v6 = vadd.f32 %v1736_v27, %v4790_v58  ;;  %2637 = vmatpush1.bf16.msra.mxu0 %v4019_v40  ;;  %2863 = vmatpush1.bf16.msra.mxu1 %v4022_v18  ;;  %v1802_v2 = vmax.f32 %v3466_v21, 0.0  ;;  %v1804_v5 = vmax.f32 %v3498_v54, 0.0 }
 0x209   :  { %v1805_v9 = vmax.f32 %v3467_v46, 0.0  ;;  %v1807_v16 = vmax.f32 %v3499_v17, 0.0  ;;  %2638 = vmatprep.subr.bf16.mxu0 %v4027_v12  ;;  %2864 = vmatprep.subr.bf16.mxu1 %v4030_v25 }
 0x20a   :  { %v1806_v52 = vmax.f32 %v3468_v49, 0.0  ;;  %v1808_v55 = vmax.f32 %v3500_v6, 0.0 }
 0x20b   :  { %v1849_v10 = vpack.c.bf16 %v1805_v9, %v1801_v50  ;;  %v4848_v30 = vpack.c.bf16 %v1807_v16, %v1803_v1 }
 0x20c   :  { %v1850_v23 = vpack.c.bf16 %v1806_v52, %v1802_v2  ;;  %v4850_v4 = vpack.c.bf16 %v1808_v55, %v1804_v5  ;;  %v1514_v19 = vpop.f32.mrb[20].mxu0  ;;  %v1740_v8 = vpop.f32.mrb[20].mxu1  ;;  %2639 = vmatpush1.bf16.msra.mxu0 %v4025_v60  ;;  %2865 = vmatpush1.bf16.msra.mxu1 %v4028_v61 }
 0x20d   :  { %v3469_v24 = vadd.f32 %v1514_v19, %v4781_v35  ;;  %v3501_v20 = vadd.f32 %v1740_v8, %v4784_v28  ;;  %v1516_v57 = vpop.f32.mrb[21].mxu0  ;;  %v1742_v48 = vpop.f32.mrb[21].mxu1  ;;  %2640 = vmatprep.subr.bf16.mxu0 %v4033_v22  ;;  %2866 = vmatprep.subr.bf16.mxu1 %v4036_v43 }
 0x20e   :  { %v3470_v51 = vadd.f32 %v1516_v57, %v4787_v62  ;;  %v3502_v44 = vadd.f32 %v1742_v48, %v4790_v58  ;;  %v1518_v45 = vpop.f32.mrb[22].mxu0  ;;  %v1744_v53 = vpop.f32.mrb[22].mxu1  ;;  %2583 = vmatprep.mubr.bf16.mxu0 %v1850_v23  ;;  %2809 = vmatprep.mubr.bf16.mxu1 %v1850_v23 }
 0x20f   :  { %v3471_v11 = vadd.f32 %v1518_v45, %v4781_v35  ;;  %v3503_v39 = vadd.f32 %v1744_v53, %v4784_v28  ;;  %v1520_v40 = vpop.f32.mrb[23].mxu0  ;;  %v1746_v18 = vpop.f32.mrb[23].mxu1  ;;  %2584 = vmatmul.mubr.bf16.gmra.mrb[48].mxu0 %v1849_v10  ;;  %2810 = vmatmul.mubr.bf16.gmra.mrb[48].mxu1 %v1849_v10  ;;  %v1809_v42 = vmax.f32 %v3469_v24, 0.0  ;;  %v1811_v14 = vmax.f32 %v3501_v20, 0.0 }
 0x210   :  { %v3472_v41 = vadd.f32 %v1520_v40, %v4787_v62  ;;  %v3504_v31 = vadd.f32 %v1746_v18, %v4790_v58  ;;  %2641 = vmatpush1.bf16.msra.mxu0 %v4031_v38  ;;  %2867 = vmatpush1.bf16.msra.mxu1 %v4034_v56  ;;  %v1810_v21 = vmax.f32 %v3470_v51, 0.0  ;;  %v1812_v54 = vmax.f32 %v3502_v44, 0.0 }
 0x211   :  { %v1813_v12 = vmax.f32 %v3471_v11, 0.0  ;;  %v1815_v25 = vmax.f32 %v3503_v39, 0.0 }
 0x212   :  { %v1814_v37 = vmax.f32 %v3472_v41, 0.0  ;;  %v1816_v59 = vmax.f32 %v3504_v31, 0.0 }
 0x213   :  { %v1853_v46 = vpack.c.bf16 %v1813_v12, %v1809_v42  ;;  %v4860_v17 = vpack.c.bf16 %v1815_v25, %v1811_v14 }
 0x214   :  { %v1854_v15 = vpack.c.bf16 %v1814_v37, %v1810_v21  ;;  %v4862_v27 = vpack.c.bf16 %v1816_v59, %v1812_v54  ;;  %v1524_v49 = vpop.f32.mrb[24].mxu0  ;;  %v1750_v6 = vpop.f32.mrb[24].mxu1 }
 0x215   :  { %v3473_v60 = vadd.f32 %v1524_v49, %v4781_v35  ;;  %v3505_v61 = vadd.f32 %v1750_v6, %v4784_v28  ;;  %v1526_v22 = vpop.f32.mrb[25].mxu0  ;;  %v1752_v50 = vpop.f32.mrb[25].mxu1 }
 0x216   :  { %v3474_v1 = vadd.f32 %v1526_v22, %v4787_v62  ;;  %v3506_v9 = vadd.f32 %v1752_v50, %v4790_v58  ;;  %v1528_v16 = vpop.f32.mrb[26].mxu0  ;;  %v1754_v43 = vpop.f32.mrb[26].mxu1  ;;  %2593 = vmatprep.mubr.bf16.mxu0 %v1854_v15  ;;  %2819 = vmatprep.mubr.bf16.mxu1 %v1854_v15 }
 0x217   :  { %v3475_v2 = vadd.f32 %v1528_v16, %v4781_v35  ;;  %v3507_v5 = vadd.f32 %v1754_v43, %v4784_v28  ;;  %v1530_v52 = vpop.f32.mrb[27].mxu0  ;;  %v1756_v55 = vpop.f32.mrb[27].mxu1  ;;  %2594 = vmatmul.mubr.bf16.gmra.mrb[52].mxu0 %v1853_v46  ;;  %2820 = vmatmul.mubr.bf16.gmra.mrb[52].mxu1 %v1853_v46  ;;  %v1817_v19 = vmax.f32 %v3473_v60, 0.0  ;;  %v1819_v8 = vmax.f32 %v3505_v61, 0.0 }
 0x218   :  { %v3476_v10 = vadd.f32 %v1530_v52, %v4787_v62  ;;  %v3508_v23 = vadd.f32 %v1756_v55, %v4790_v58  ;;  %v1818_v24 = vmax.f32 %v3474_v1, 0.0  ;;  %v1820_v20 = vmax.f32 %v3506_v9, 0.0 }
 0x219   :  { %v1821_v38 = vmax.f32 %v3475_v2, 0.0  ;;  %v1823_v56 = vmax.f32 %v3507_v5, 0.0 }
 0x21a   :  { %v1822_v57 = vmax.f32 %v3476_v10, 0.0  ;;  %v1824_v48 = vmax.f32 %v3508_v23, 0.0 }
 0x21b   :  { %v1857_v51 = vpack.c.bf16 %v1821_v38, %v1817_v19  ;;  %v4872_v44 = vpack.c.bf16 %v1823_v56, %v1819_v8 }
 0x21c   :  { %v1858_v45 = vpack.c.bf16 %v1822_v57, %v1818_v24  ;;  %v1860_v53 = vpack.c.bf16 %v1824_v48, %v1820_v20  ;;  %v1534_v11 = vpop.f32.mrb[28].mxu0  ;;  %v1760_v39 = vpop.f32.mrb[28].mxu1 }
 0x21d   :  { %v3477_v40 = vadd.f32 %v1534_v11, %v4781_v35  ;;  %v3509_v18 = vadd.f32 %v1760_v39, %v4784_v28  ;;  %v1536_v41 = vpop.f32.mrb[29].mxu0  ;;  %v1762_v31 = vpop.f32.mrb[29].mxu1 }
 0x21e   :  { %v3478_v42 = vadd.f32 %v1536_v41, %v4787_v62  ;;  %v3510_v14 = vadd.f32 %v1762_v31, %v4790_v58  ;;  %v1538_v12 = vpop.f32.mrb[30].mxu0  ;;  %v1764_v25 = vpop.f32.mrb[30].mxu1  ;;  %2603 = vmatprep.mubr.bf16.mxu0 %v1858_v45  ;;  %2829 = vmatprep.mubr.bf16.mxu1 %v1858_v45 }
 0x21f   :  { %v3479_v21 = vadd.f32 %v1538_v12, %v4781_v35  ;;  %v3511_v54 = vadd.f32 %v1764_v25, %v4784_v28  ;;  %v1540_v37 = vpop.f32.mrb[31].mxu0  ;;  %v1766_v59 = vpop.f32.mrb[31].mxu1  ;;  %2604 = vmatmul.mubr.bf16.gmra.mrb[56].mxu0 %v1857_v51  ;;  %2830 = vmatmul.mubr.bf16.gmra.mrb[56].mxu1 %v1857_v51  ;;  %v1825_v49 = vmax.f32 %v3477_v40, 0.0  ;;  %v1827_v6 = vmax.f32 %v3509_v18, 0.0 }
 0x220   :  { %v3480_v46 = vadd.f32 %v1540_v37, %v4787_v62  ;;  %v3512_v15 = vadd.f32 %v1766_v59, %v4790_v58  ;;  %v1826_v22 = vmax.f32 %v3478_v42, 0.0  ;;  %v1828_v50 = vmax.f32 %v3510_v14, 0.0  ;;  %v4927_v62 = vld [vmem:[%s5052_s7] sm:$0xff]  ;;  %v4932_v58 = vld [vmem:[%s5052_s7 + $0x8] sm:$0xff] }
 0x221   :  { %v1829_v60 = vmax.f32 %v3479_v21, 0.0  ;;  %v1831_v61 = vmax.f32 %v3511_v54, 0.0 }
 0x222   :  { %v1830_v1 = vmax.f32 %v3480_v46, 0.0  ;;  %v1832_v9 = vmax.f32 %v3512_v15, 0.0 }
 0x223   :  { %v1861_v16 = vpack.c.bf16 %v1829_v60, %v1825_v49  ;;  %v1863_v35 = vpack.c.bf16 %v1831_v61, %v1827_v6 }
 0x224   :  { %v1862_v43 = vpack.c.bf16 %v1830_v1, %v1826_v22  ;;  %v1864_v28 = vpack.c.bf16 %v1832_v9, %v1828_v50 }
 0x226   :  { %2613 = vmatprep.mubr.bf16.mxu0 %v1862_v43  ;;  %2839 = vmatprep.mubr.bf16.mxu1 %v1862_v43 }
 0x227   :  { %2614 = vmatmul.mubr.bf16.gmra.mrb[60].mxu0 %v1861_v16  ;;  %2840 = vmatmul.mubr.bf16.gmra.mrb[60].mxu1 %v1861_v16 }
 0x228   :  { %3420 = vmatprep.mubr.msk.bf16.mxu0 %vm1292_vm0, %v4802_v33  ;;  %3428 = vmatprep.mubr.msk.bf16.mxu1 %vm1292_vm0, %v4802_v33  ;;  %v3439_v33 = vcombine.high %v4932_v58, %v4932_v58 }
 0x22f   :  { %2657 = vmatmul.mubr.bf16.vlgmr.msra.gmra.mrb[32].mxu0 %v4800_v63  ;;  %2883 = vmatmul.mubr.bf16.vlgmr.msra.gmra.mrb[32].mxu1 %v4800_v63  ;;  %v3437_v63 = vcombine.high %v4927_v62, %v4927_v62 }
 0x230   :  { %3421 = vmatprep.mubr.msk.bf16.mxu0 %vm1292_vm0, %v4814_v0  ;;  %3429 = vmatprep.mubr.msk.bf16.mxu1 %vm1292_vm0, %v4814_v0  ;;  %v1965_v0 = vld [vmem:[%s5051_s6] sm:$0xf]  ;;  %s4119_s6 = smov [#allocation7]  }
 0x231   :  { %s3194_s7 = sshll.u32 %s4119_s6, 4  ;;  %s3195_s7 = int_to_ptr.vmem [resolvable:$true] %s3194_s7 }
 0x232   :  { %p4090_p3 = scmp.lt.s32.totalorder %s3195_s7, %s3195_s7 }
 0x237   :  { %2667 = vmatmul.mubr.bf16.gmra.mrb[36].mxu0 %v4812_v34  ;;  %2893 = vmatmul.mubr.bf16.gmra.mrb[36].mxu1 %v4812_v34  ;;  %v3061_v34 = vld [vmem:[%s5053_s8] sm:$0xff]  ;;  %s4085_s8 = scalar_lea.vmem %s3195_s7, 128 }
 0x238   :  { %3422 = vmatprep.mubr.msk.bf16.mxu0 %vm1292_vm0, %v4826_v7  ;;  %3430 = vmatprep.mubr.msk.bf16.mxu1 %vm1292_vm0, %v4826_v7  ;;  %v4949_v7 = vrot.slane %v1965_v0, %v5080_v36  ;;  %p4086_p2 = scmp.ne.s32.totalorder %s3195_s7, %s4085_s8  ;;  %p4091_p4 = scmp.lt.s32.totalorder %s4085_s8, %s4085_s8 }
 0x239   :  { %3064 = vperm.xlu1 %3735, %v3061_v34  }
 0x23a   :  { %p4092_p5 = por %p4091_p4, %p4090_p3 }
 0x23c   :  { %p4093_p6 = pnand %p4092_p5, %p4086_p2 }
 0x23f   :  { %2677 = vmatmul.mubr.bf16.gmra.mrb[40].mxu0 %v4824_v32  ;;  %2903 = vmatmul.mubr.bf16.gmra.mrb[40].mxu1 %v4824_v32  ;;  %v4946_v32 = vrot.slane %v1965_v0, %v5079_v29 }
 0x240   :  { %3423 = vmatprep.mubr.msk.bf16.mxu0 %vm1292_vm0, %v4838_v26  ;;  %3431 = vmatprep.mubr.msk.bf16.mxu1 %vm1292_vm0, %v4838_v26  ;;  %v4955_v26 = vrot.slane %v1965_v0, %v5082_v3 }
 0x247   :  { %2687 = vmatmul.mubr.bf16.gmra.mrb[44].mxu0 %v4836_v47  ;;  %2913 = vmatmul.mubr.bf16.gmra.mrb[44].mxu1 %v4836_v47  ;;  %v4952_v47 = vrot.slane %v1965_v0, %v5081_v13 }
 0x248   :  { %3424 = vmatprep.mubr.msk.bf16.mxu0 %vm1292_vm0, %v4850_v4  ;;  %3432 = vmatprep.mubr.msk.bf16.mxu1 %vm1292_vm0, %v4850_v4 }
 0x24f   :  { %2697 = vmatmul.mubr.bf16.gmra.mrb[48].mxu0 %v4848_v30  ;;  %2923 = vmatmul.mubr.bf16.gmra.mrb[48].mxu1 %v4848_v30 }
 0x250   :  { %3425 = vmatprep.mubr.msk.bf16.mxu0 %vm1292_vm0, %v4862_v27  ;;  %3433 = vmatprep.mubr.msk.bf16.mxu1 %vm1292_vm0, %v4862_v27 }
 0x257   :  { %2707 = vmatmul.mubr.bf16.gmra.mrb[52].mxu0 %v4860_v17  ;;  %2933 = vmatmul.mubr.bf16.gmra.mrb[52].mxu1 %v4860_v17 }
 0x258   :  { %3426 = vmatprep.mubr.msk.bf16.mxu0 %vm1292_vm0, %v1860_v53  ;;  %3434 = vmatprep.mubr.msk.bf16.mxu1 %vm1292_vm0, %v1860_v53 }
 0x25f   :  { %2717 = vmatmul.mubr.bf16.gmra.mrb[56].mxu0 %v4872_v44  ;;  %2943 = vmatmul.mubr.bf16.gmra.mrb[56].mxu1 %v4872_v44 }
 0x260   :  { %3427 = vmatprep.mubr.msk.bf16.mxu0 %vm1292_vm0, %v1864_v28  ;;  %3435 = vmatprep.mubr.msk.bf16.mxu1 %vm1292_vm0, %v1864_v28 }
 0x267   :  { %2727 = vmatmul.mubr.bf16.gmra.mrb[60].mxu0 %v1863_v35  ;;  %2953 = vmatmul.mubr.bf16.gmra.mrb[60].mxu1 %v1863_v35 }
 0x268   :  { %3139 = vmatprep.mubr.bf16.mxu1 %v3437_v63  ;;  %3448 = vmatprep.mubr.msk.bf16.mxu0 %vm1292_vm0, %v3439_v33 }
 0x302   :  { %v2658_v30 = vpop.f32.mrb[32].mxu0  ;;  %v2884_v4 = vpop.f32.mrb[32].mxu1 }
 0x303   :  { %v3513_v17 = vadd.f32 %v2658_v30, %v4946_v32  ;;  %v3545_v27 = vadd.f32 %v2884_v4, %v4949_v7  ;;  %v2660_v2 = vpop.f32.mrb[33].mxu0  ;;  %v2886_v5 = vpop.f32.mrb[33].mxu1 }
 0x304   :  { %v3514_v29 = vadd.f32 %v2660_v2, %v4952_v47  ;;  %v3546_v52 = vadd.f32 %v2886_v5, %v4955_v26  ;;  %v2662_v36 = vpop.f32.mrb[34].mxu0  ;;  %v2888_v55 = vpop.f32.mrb[34].mxu1 }
 0x305   :  { %v3515_v13 = vadd.f32 %v2662_v36, %v4946_v32  ;;  %v3547_v10 = vadd.f32 %v2888_v55, %v4949_v7  ;;  %v2664_v3 = vpop.f32.mrb[35].mxu0  ;;  %v2890_v23 = vpop.f32.mrb[35].mxu1  ;;  %v2963_v38 = vmax.f32 %v3513_v17, 0.0  ;;  %v2965_v56 = vmax.f32 %v3545_v27, 0.0 }
 0x306   :  { %v3516_v19 = vadd.f32 %v2664_v3, %v4952_v47  ;;  %v3548_v8 = vadd.f32 %v2890_v23, %v4955_v26  ;;  %v2964_v57 = vmax.f32 %v3514_v29, 0.0  ;;  %v2966_v48 = vmax.f32 %v3546_v52, 0.0 }
 0x307   :  { %v2967_v24 = vmax.f32 %v3515_v13, 0.0  ;;  %v2969_v20 = vmax.f32 %v3547_v10, 0.0 }
 0x308   :  { %v2968_v51 = vmax.f32 %v3516_v19, 0.0  ;;  %v2970_v44 = vmax.f32 %v3548_v8, 0.0 }
 0x309   :  { %v3029_v45 = vpack.c.bf16 %v2967_v24, %v2963_v38  ;;  %v3031_v53 = vpack.c.bf16 %v2969_v20, %v2965_v56 }
 0x30a   :  { %v3030_v11 = vpack.c.bf16 %v2968_v51, %v2964_v57  ;;  %v3032_v39 = vpack.c.bf16 %v2970_v44, %v2966_v48  ;;  %v2668_v40 = vpop.f32.mrb[36].mxu0  ;;  %v2894_v18 = vpop.f32.mrb[36].mxu1 }
 0x30b   :  { %v3517_v41 = vadd.f32 %v2668_v40, %v4946_v32  ;;  %v3549_v31 = vadd.f32 %v2894_v18, %v4949_v7  ;;  %v2670_v42 = vpop.f32.mrb[37].mxu0  ;;  %v2896_v14 = vpop.f32.mrb[37].mxu1 }
 0x30c   :  { %v3518_v12 = vadd.f32 %v2670_v42, %v4952_v47  ;;  %v3550_v25 = vadd.f32 %v2896_v14, %v4955_v26  ;;  %v2672_v21 = vpop.f32.mrb[38].mxu0  ;;  %v2898_v54 = vpop.f32.mrb[38].mxu1  ;;  %3107 = vmatprep.subr.bf16.mxu1 %v3030_v11  ;;  %3440 = vmatprep.subr.msk.bf16.mxu0 %vm1292_vm0, %v3032_v39 }
 0x30d   :  { %v3519_v37 = vadd.f32 %v2672_v21, %v4946_v32  ;;  %v3551_v59 = vadd.f32 %v2898_v54, %v4949_v7  ;;  %v2674_v46 = vpop.f32.mrb[39].mxu0  ;;  %v2900_v15 = vpop.f32.mrb[39].mxu1  ;;  %3108 = vmatpush1.bf16.xpose.msra.mxu1 %v3029_v45  ;;  %3148 = vmatpush1.bf16.xpose.msra.mxu0 %v3031_v53  ;;  %v2971_v60 = vmax.f32 %v3517_v41, 0.0  ;;  %v2973_v61 = vmax.f32 %v3549_v31, 0.0 }
 0x30e   :  { %v3520_v49 = vadd.f32 %v2674_v46, %v4952_v47  ;;  %v3552_v6 = vadd.f32 %v2900_v15, %v4955_v26  ;;  %v2972_v1 = vmax.f32 %v3518_v12, 0.0  ;;  %v2974_v9 = vmax.f32 %v3550_v25, 0.0 }
 0x30f   :  { %v2975_v22 = vmax.f32 %v3519_v37, 0.0  ;;  %v2977_v50 = vmax.f32 %v3551_v59, 0.0 }
 0x310   :  { %v2976_v16 = vmax.f32 %v3520_v49, 0.0  ;;  %v2978_v35 = vmax.f32 %v3552_v6, 0.0 }
 0x311   :  { %v3033_v43 = vpack.c.bf16 %v2975_v22, %v2971_v60  ;;  %v3035_v28 = vpack.c.bf16 %v2977_v50, %v2973_v61 }
 0x312   :  { %v3034_v63 = vpack.c.bf16 %v2976_v16, %v2972_v1  ;;  %v3036_v33 = vpack.c.bf16 %v2978_v35, %v2974_v9  ;;  %v2678_v34 = vpop.f32.mrb[40].mxu0  ;;  %v2904_v0 = vpop.f32.mrb[40].mxu1 }
 0x313   :  { %v3521_v30 = vadd.f32 %v2678_v34, %v4946_v32  ;;  %v3553_v4 = vadd.f32 %v2904_v0, %v4949_v7  ;;  %v2680_v17 = vpop.f32.mrb[41].mxu0  ;;  %v2906_v27 = vpop.f32.mrb[41].mxu1 }
 0x314   :  { %v3522_v2 = vadd.f32 %v2680_v17, %v4952_v47  ;;  %v3554_v5 = vadd.f32 %v2906_v27, %v4955_v26  ;;  %v2682_v29 = vpop.f32.mrb[42].mxu0  ;;  %v2908_v52 = vpop.f32.mrb[42].mxu1  ;;  %3109 = vmatprep.subr.bf16.mxu1 %v3034_v63  ;;  %3441 = vmatprep.subr.msk.bf16.mxu0 %vm1292_vm0, %v3036_v33 }
 0x315   :  { %v3523_v36 = vadd.f32 %v2682_v29, %v4946_v32  ;;  %v3555_v55 = vadd.f32 %v2908_v52, %v4949_v7  ;;  %v2684_v13 = vpop.f32.mrb[43].mxu0  ;;  %v2910_v10 = vpop.f32.mrb[43].mxu1  ;;  %3110 = vmatpush1.bf16.xpose.msra.mxu1 %v3033_v43  ;;  %3150 = vmatpush1.bf16.xpose.msra.mxu0 %v3035_v28  ;;  %v2979_v19 = vmax.f32 %v3521_v30, 0.0  ;;  %v2981_v8 = vmax.f32 %v3553_v4, 0.0 }
 0x316   :  { %v3524_v3 = vadd.f32 %v2684_v13, %v4952_v47  ;;  %v3556_v23 = vadd.f32 %v2910_v10, %v4955_v26  ;;  %v2980_v24 = vmax.f32 %v3522_v2, 0.0  ;;  %v2982_v20 = vmax.f32 %v3554_v5, 0.0 }
 0x317   :  { %v2983_v38 = vmax.f32 %v3523_v36, 0.0  ;;  %v2985_v56 = vmax.f32 %v3555_v55, 0.0 }
 0x318   :  { %v2984_v57 = vmax.f32 %v3524_v3, 0.0  ;;  %v2986_v48 = vmax.f32 %v3556_v23, 0.0 }
 0x319   :  { %v3037_v51 = vpack.c.bf16 %v2983_v38, %v2979_v19  ;;  %v3039_v44 = vpack.c.bf16 %v2985_v56, %v2981_v8 }
 0x31a   :  { %v3038_v45 = vpack.c.bf16 %v2984_v57, %v2980_v24  ;;  %v3040_v53 = vpack.c.bf16 %v2986_v48, %v2982_v20  ;;  %v2688_v11 = vpop.f32.mrb[44].mxu0  ;;  %v2914_v39 = vpop.f32.mrb[44].mxu1 }
 0x31b   :  { %v3525_v40 = vadd.f32 %v2688_v11, %v4946_v32  ;;  %v3557_v18 = vadd.f32 %v2914_v39, %v4949_v7  ;;  %v2690_v41 = vpop.f32.mrb[45].mxu0  ;;  %v2916_v31 = vpop.f32.mrb[45].mxu1 }
 0x31c   :  { %v3526_v42 = vadd.f32 %v2690_v41, %v4952_v47  ;;  %v3558_v14 = vadd.f32 %v2916_v31, %v4955_v26  ;;  %v2692_v12 = vpop.f32.mrb[46].mxu0  ;;  %v2918_v25 = vpop.f32.mrb[46].mxu1  ;;  %3111 = vmatprep.subr.bf16.mxu1 %v3038_v45  ;;  %3442 = vmatprep.subr.msk.bf16.mxu0 %vm1292_vm0, %v3040_v53 }
 0x31d   :  { %v3527_v21 = vadd.f32 %v2692_v12, %v4946_v32  ;;  %v3559_v54 = vadd.f32 %v2918_v25, %v4949_v7  ;;  %v2694_v37 = vpop.f32.mrb[47].mxu0  ;;  %v2920_v59 = vpop.f32.mrb[47].mxu1  ;;  %3112 = vmatpush1.bf16.xpose.msra.mxu1 %v3037_v51  ;;  %3152 = vmatpush1.bf16.xpose.msra.mxu0 %v3039_v44  ;;  %v2987_v49 = vmax.f32 %v3525_v40, 0.0  ;;  %v2989_v6 = vmax.f32 %v3557_v18, 0.0 }
 0x31e   :  { %v3528_v46 = vadd.f32 %v2694_v37, %v4952_v47  ;;  %v3560_v15 = vadd.f32 %v2920_v59, %v4955_v26  ;;  %v2988_v22 = vmax.f32 %v3526_v42, 0.0  ;;  %v2990_v50 = vmax.f32 %v3558_v14, 0.0 }
 0x31f   :  { %v2991_v60 = vmax.f32 %v3527_v21, 0.0  ;;  %v2993_v61 = vmax.f32 %v3559_v54, 0.0 }
 0x320   :  { %v2992_v1 = vmax.f32 %v3528_v46, 0.0  ;;  %v2994_v9 = vmax.f32 %v3560_v15, 0.0 }
 0x321   :  { %v3041_v16 = vpack.c.bf16 %v2991_v60, %v2987_v49  ;;  %v3043_v35 = vpack.c.bf16 %v2993_v61, %v2989_v6 }
 0x322   :  { %v3042_v43 = vpack.c.bf16 %v2992_v1, %v2988_v22  ;;  %v3044_v28 = vpack.c.bf16 %v2994_v9, %v2990_v50  ;;  %v2698_v63 = vpop.f32.mrb[48].mxu0  ;;  %v2924_v33 = vpop.f32.mrb[48].mxu1 }
 0x323   :  { %v3529_v34 = vadd.f32 %v2698_v63, %v4946_v32  ;;  %v3561_v0 = vadd.f32 %v2924_v33, %v4949_v7  ;;  %v2700_v30 = vpop.f32.mrb[49].mxu0  ;;  %v2926_v4 = vpop.f32.mrb[49].mxu1 }
 0x324   :  { %v3530_v17 = vadd.f32 %v2700_v30, %v4952_v47  ;;  %v3562_v27 = vadd.f32 %v2926_v4, %v4955_v26  ;;  %v2702_v2 = vpop.f32.mrb[50].mxu0  ;;  %v2928_v5 = vpop.f32.mrb[50].mxu1  ;;  %3113 = vmatprep.subr.bf16.mxu1 %v3042_v43  ;;  %3443 = vmatprep.subr.msk.bf16.mxu0 %vm1292_vm0, %v3044_v28 }
 0x325   :  { %v3531_v29 = vadd.f32 %v2702_v2, %v4946_v32  ;;  %v3563_v52 = vadd.f32 %v2928_v5, %v4949_v7  ;;  %v2704_v36 = vpop.f32.mrb[51].mxu0  ;;  %v2930_v55 = vpop.f32.mrb[51].mxu1  ;;  %3114 = vmatpush1.bf16.xpose.msra.mxu1 %v3041_v16  ;;  %3154 = vmatpush1.bf16.xpose.msra.mxu0 %v3043_v35  ;;  %v2995_v3 = vmax.f32 %v3529_v34, 0.0  ;;  %v2997_v23 = vmax.f32 %v3561_v0, 0.0 }
 0x326   :  { %v3532_v13 = vadd.f32 %v2704_v36, %v4952_v47  ;;  %v3564_v10 = vadd.f32 %v2930_v55, %v4955_v26  ;;  %v2996_v38 = vmax.f32 %v3530_v17, 0.0  ;;  %v2998_v56 = vmax.f32 %v3562_v27, 0.0 }
 0x327   :  { %v2999_v19 = vmax.f32 %v3531_v29, 0.0  ;;  %v3001_v8 = vmax.f32 %v3563_v52, 0.0 }
 0x328   :  { %v3000_v24 = vmax.f32 %v3532_v13, 0.0  ;;  %v3002_v20 = vmax.f32 %v3564_v10, 0.0 }
 0x329   :  { %v3045_v57 = vpack.c.bf16 %v2999_v19, %v2995_v3  ;;  %v3047_v48 = vpack.c.bf16 %v3001_v8, %v2997_v23 }
 0x32a   :  { %v3046_v51 = vpack.c.bf16 %v3000_v24, %v2996_v38  ;;  %v3048_v44 = vpack.c.bf16 %v3002_v20, %v2998_v56  ;;  %v2708_v45 = vpop.f32.mrb[52].mxu0  ;;  %v2934_v53 = vpop.f32.mrb[52].mxu1 }
 0x32b   :  { %v3533_v11 = vadd.f32 %v2708_v45, %v4946_v32  ;;  %v3565_v39 = vadd.f32 %v2934_v53, %v4949_v7  ;;  %v2710_v40 = vpop.f32.mrb[53].mxu0  ;;  %v2936_v18 = vpop.f32.mrb[53].mxu1 }
 0x32c   :  { %v3534_v41 = vadd.f32 %v2710_v40, %v4952_v47  ;;  %v3566_v31 = vadd.f32 %v2936_v18, %v4955_v26  ;;  %v2712_v42 = vpop.f32.mrb[54].mxu0  ;;  %v2938_v14 = vpop.f32.mrb[54].mxu1  ;;  %3115 = vmatprep.subr.bf16.mxu1 %v3046_v51  ;;  %3444 = vmatprep.subr.msk.bf16.mxu0 %vm1292_vm0, %v3048_v44 }
 0x32d   :  { %v3535_v12 = vadd.f32 %v2712_v42, %v4946_v32  ;;  %v3567_v25 = vadd.f32 %v2938_v14, %v4949_v7  ;;  %v2714_v21 = vpop.f32.mrb[55].mxu0  ;;  %v2940_v54 = vpop.f32.mrb[55].mxu1  ;;  %3116 = vmatpush1.bf16.xpose.msra.mxu1 %v3045_v57  ;;  %3156 = vmatpush1.bf16.xpose.msra.mxu0 %v3047_v48  ;;  %v3003_v46 = vmax.f32 %v3533_v11, 0.0  ;;  %v3005_v15 = vmax.f32 %v3565_v39, 0.0 }
 0x32e   :  { %v3536_v37 = vadd.f32 %v2714_v21, %v4952_v47  ;;  %v3568_v59 = vadd.f32 %v2940_v54, %v4955_v26  ;;  %v3004_v60 = vmax.f32 %v3534_v41, 0.0  ;;  %v3006_v61 = vmax.f32 %v3566_v31, 0.0 }
 0x32f   :  { %v3007_v49 = vmax.f32 %v3535_v12, 0.0  ;;  %v3009_v6 = vmax.f32 %v3567_v25, 0.0 }
 0x330   :  { %v3008_v22 = vmax.f32 %v3536_v37, 0.0  ;;  %v3010_v50 = vmax.f32 %v3568_v59, 0.0 }
 0x331   :  { %v3049_v1 = vpack.c.bf16 %v3007_v49, %v3003_v46  ;;  %v3051_v9 = vpack.c.bf16 %v3009_v6, %v3005_v15 }
 0x332   :  { %v3050_v16 = vpack.c.bf16 %v3008_v22, %v3004_v60  ;;  %v3052_v35 = vpack.c.bf16 %v3010_v50, %v3006_v61  ;;  %v2718_v43 = vpop.f32.mrb[56].mxu0  ;;  %v2944_v28 = vpop.f32.mrb[56].mxu1 }
 0x333   :  { %v3537_v63 = vadd.f32 %v2718_v43, %v4946_v32  ;;  %v3569_v33 = vadd.f32 %v2944_v28, %v4949_v7  ;;  %v2720_v34 = vpop.f32.mrb[57].mxu0  ;;  %v2946_v0 = vpop.f32.mrb[57].mxu1 }
 0x334   :  { %v3538_v30 = vadd.f32 %v2720_v34, %v4952_v47  ;;  %v3570_v4 = vadd.f32 %v2946_v0, %v4955_v26  ;;  %v2722_v17 = vpop.f32.mrb[58].mxu0  ;;  %v2948_v27 = vpop.f32.mrb[58].mxu1  ;;  %3117 = vmatprep.subr.bf16.mxu1 %v3050_v16  ;;  %3445 = vmatprep.subr.msk.bf16.mxu0 %vm1292_vm0, %v3052_v35 }
 0x335   :  { %v3539_v2 = vadd.f32 %v2722_v17, %v4946_v32  ;;  %v3571_v5 = vadd.f32 %v2948_v27, %v4949_v7  ;;  %v2724_v29 = vpop.f32.mrb[59].mxu0  ;;  %v2950_v52 = vpop.f32.mrb[59].mxu1  ;;  %3118 = vmatpush1.bf16.xpose.msra.mxu1 %v3049_v1  ;;  %3158 = vmatpush1.bf16.xpose.msra.mxu0 %v3051_v9  ;;  %v3011_v13 = vmax.f32 %v3537_v63, 0.0  ;;  %v3013_v10 = vmax.f32 %v3569_v33, 0.0 }
 0x336   :  { %v3540_v36 = vadd.f32 %v2724_v29, %v4952_v47  ;;  %v3572_v55 = vadd.f32 %v2950_v52, %v4955_v26  ;;  %v3012_v19 = vmax.f32 %v3538_v30, 0.0  ;;  %v3014_v8 = vmax.f32 %v3570_v4, 0.0  ;;  %v3065_v1 = vpop.permute.xlu1 %3064 }
 0x337   :  { %v3015_v3 = vmax.f32 %v3539_v2, 0.0  ;;  %v3017_v23 = vmax.f32 %v3571_v5, 0.0 }
 0x338   :  { %v3016_v38 = vmax.f32 %v3540_v36, 0.0  ;;  %v3018_v56 = vmax.f32 %v3572_v55, 0.0 }
 0x339   :  { %v3053_v24 = vpack.c.bf16 %v3015_v3, %v3011_v13  ;;  %v3055_v20 = vpack.c.bf16 %v3017_v23, %v3013_v10 }
 0x33a   :  { %v3054_v57 = vpack.c.bf16 %v3016_v38, %v3012_v19  ;;  %v3056_v48 = vpack.c.bf16 %v3018_v56, %v3014_v8  ;;  %v2728_v51 = vpop.f32.mrb[60].mxu0  ;;  %v2954_v44 = vpop.f32.mrb[60].mxu1 }
 0x33b   :  { %v3541_v45 = vadd.f32 %v2728_v51, %v4946_v32  ;;  %v3573_v53 = vadd.f32 %v2954_v44, %v4949_v7  ;;  %v2730_v11 = vpop.f32.mrb[61].mxu0  ;;  %v2956_v39 = vpop.f32.mrb[61].mxu1 }
 0x33c   :  { %v3542_v40 = vadd.f32 %v2730_v11, %v4952_v47  ;;  %v3574_v18 = vadd.f32 %v2956_v39, %v4955_v26  ;;  %v2732_v41 = vpop.f32.mrb[62].mxu0  ;;  %v2958_v31 = vpop.f32.mrb[62].mxu1  ;;  %3119 = vmatprep.subr.bf16.mxu1 %v3054_v57  ;;  %3446 = vmatprep.subr.msk.bf16.mxu0 %vm1292_vm0, %v3056_v48 }
 0x33d   :  { %v3543_v42 = vadd.f32 %v2732_v41, %v4946_v32  ;;  %v3575_v14 = vadd.f32 %v2958_v31, %v4949_v7  ;;  %v2734_v12 = vpop.f32.mrb[63].mxu0  ;;  %v2960_v25 = vpop.f32.mrb[63].mxu1  ;;  %3120 = vmatpush1.bf16.xpose.msra.mxu1 %v3053_v24  ;;  %3160 = vmatpush1.bf16.xpose.msra.mxu0 %v3055_v20  ;;  %v3019_v37 = vmax.f32 %v3541_v45, 0.0  ;;  %v3021_v59 = vmax.f32 %v3573_v53, 0.0 }
 0x33e   :  { %v3544_v21 = vadd.f32 %v2734_v12, %v4952_v47  ;;  %v3576_v54 = vadd.f32 %v2960_v25, %v4955_v26  ;;  %v3020_v49 = vmax.f32 %v3542_v40, 0.0  ;;  %v3022_v6 = vmax.f32 %v3574_v18, 0.0 }
 0x33f   :  { %v3023_v46 = vmax.f32 %v3543_v42, 0.0  ;;  %v3025_v15 = vmax.f32 %v3575_v14, 0.0  ;;  %v3436_v47 = vcombine.low %v4927_v62, %v4927_v62  ;;  %v3438_v26 = vcombine.low %v4932_v58, %v4932_v58 }
 0x340   :  { %v3024_v60 = vmax.f32 %v3544_v21, 0.0  ;;  %v3026_v61 = vmax.f32 %v3576_v54, 0.0 }
 0x341   :  { %v3057_v22 = vpack.c.bf16 %v3023_v46, %v3019_v37  ;;  %v3059_v32 = vpack.c.bf16 %v3025_v15, %v3021_v59 }
 0x342   :  { %v3058_v50 = vpack.c.bf16 %v3024_v60, %v3020_v49  ;;  %v3060_v7 = vpack.c.bf16 %v3026_v61, %v3022_v6 }
 0x344   :  { %3121 = vmatprep.subr.bf16.mxu1 %v3058_v50  ;;  %3447 = vmatprep.subr.msk.bf16.mxu0 %vm1292_vm0, %v3060_v7 }
 0x345   :  { %3122 = vmatpush1.bf16.xpose.msra.mxu1 %v3057_v22  ;;  %3162 = vmatpush1.bf16.xpose.msra.mxu0 %v3059_v32 }
 0x34c   :  { %3140 = vmatmul.mubr.bf16.vlgmr.msra.gmra.mrb[64].mxu1 %v3436_v47  ;;  %3180 = vmatmul.mubr.bf16.vlgmr.msra.gmra.mrb[64].mxu0 %v3438_v26 }
 0x41f   :  { %v3141_v9 = vpop.f32.mrb[64].mxu1  ;;  %v3181_v16 = vpop.f32.mrb[64].mxu0 }
 0x420   :  { %v3142_v35 = vadd.f32 %v3141_v9, %v3065_v1  ;;  %v3143_v43 = vpop.f32.mrb[65].mxu1  ;;  %v3183_v28 = vpop.f32.mrb[65].mxu0 }
 0x421   :  { %v3144_v63 = vpop.f32.mrb[66].mxu1  ;;  %v3184_v33 = vpop.f32.mrb[66].mxu0 }
 0x422   :  { %v3182_v34 = vadd.f32 %v3181_v16, %v3142_v35  ;;  %v3145_v0 = vpop.f32.mrb[67].mxu1  ;;  %v3185_v30 = vpop.f32.mrb[67].mxu0 }
 0x424   :  { %3187 = vst [vmem:[#allocation7] sm:$0xff] %v3182_v34 }
 0x425   :  { %4096 = shalt.err (!%p4093_p6)
}
 0x426   :  { %s4097_s3 = scalar_lea.hbm %s5054_s9, 128 }
 0x427   :  { %p4098_p7 = scmp.ne.s32.totalorder %s5054_s9, %s4097_s3  ;;  %p4101_p8 = scmp.lt.u32.totalorder %s4097_s3, %s5054_s9 }
 0x429   :  { %p4103_p9 = pnand %p4101_p8, %p4098_p7 }
 0x42b   :  { %4106 = shalt.err (!%p4103_p9)
}
 0x42c   :  { %3197 = dma.vmem_to_hbm [thread:$0]  %s3195_s7, 128, %s5054_s9, [#allocation4]  }
 0x42d   :  { %4111 = dma.done.wait [#allocation4], 128  }
 0x42e   :  { %4112 = vsyncadd [#allocation4], 4294967168 }
 0x42f   :  { %3201 = vsyncpa [#allocation3], 1 }
 0x430   :  { %3202 = vsyncpa [#allocation6], 1 }
 0x431   :  { %3203 = vsyncpa [#allocation4], 1 }

</bundles_post_ra>
